<compile_context>
chip_gen: v7x
topology: tpu7x:2x2x1
jax: 0.10.0
libtpu: 0.0.40
codegen_flags: <defaults>
</compile_context>

<pallas_src>
import jax
import jax.numpy as jnp
from jax.experimental import pallas as pl
from jax.experimental.pallas import tpu as pltpu

LANE = 128
SUBLANE = 8


def cvae_fwd_kernel(
    # activations (batch-tiled)
    x_ref, a_ref, eps_ref,
    # encoder
    we_x_ref, we_a_ref, be_ref, wmu_ref, bmu_ref, wvar_ref, bvar_ref,
    # decoder
    wd1_z_ref, wd1_a_ref, bd1_ref, wd2_ref, bd2_ref,
    # attr decoder
    wa1_ref, ba1_ref, wa2_ref, ba2_ref,
    # outputs
    gen_x_ref, gen_a_ref, mu_ref, logvar_ref,
):
    x = x_ref[...]
    a = a_ref[...]

    # Encoder: hidden = relu([x, a] @ We + be); concat expressed as split matmuls.
    h = jnp.dot(x, we_x_ref[...], preferred_element_type=jnp.float32)
    h = h + jnp.dot(a, we_a_ref[...], preferred_element_type=jnp.float32)
    h = jnp.maximum(h + be_ref[...], 0.0)

    mu = jnp.dot(h, wmu_ref[...], preferred_element_type=jnp.float32) + bmu_ref[...]
    logvar = jnp.dot(h, wvar_ref[...], preferred_element_type=jnp.float32) + bvar_ref[...]

    # Reparameterization: x_sample = eps * exp(logvar / 2) + mu   (EUP exp; VPU fma)
    std = jnp.exp(logvar * 0.5)
    x_sample = eps_ref[...] * std + mu

    # Decoder: gen_x = relu([x_sample, a] @ Wd1 + bd1) @ Wd2 + bd2
    hd = jnp.dot(x_sample, wd1_z_ref[...], preferred_element_type=jnp.float32)
    hd = hd + jnp.dot(a, wd1_a_ref[...], preferred_element_type=jnp.float32)
    hd = jnp.maximum(hd + bd1_ref[...], 0.0)
    gen_x = jnp.dot(hd, wd2_ref[...], preferred_element_type=jnp.float32) + bd2_ref[...]

    # Attr decoder: gen_a = sigmoid(relu(x_sample @ Wa1 + ba1) @ Wa2 + ba2)
    ha = jnp.maximum(
        jnp.dot(x_sample, wa1_ref[...], preferred_element_type=jnp.float32) + ba1_ref[...], 0.0)
    logits_a = jnp.dot(ha, wa2_ref[...], preferred_element_type=jnp.float32) + ba2_ref[...]
    gen_a = 1.0 / (1.0 + jnp.exp(-logits_a))

    gen_x_ref[...] = gen_x.astype(gen_x_ref.dtype)
    gen_a_ref[...] = gen_a.astype(gen_a_ref.dtype)
    mu_ref[...] = mu.astype(mu_ref.dtype)
    logvar_ref[...] = logvar.astype(logvar_ref.dtype)


def _ceil_to(n, m):
    return ((n + m - 1) // m) * m


def _pad2(w, rows, cols):
    return jnp.pad(w, ((0, rows - w.shape[0]), (0, cols - w.shape[1])))


def _pad_bias(b, cols):
    return jnp.pad(b.reshape(1, -1), ((0, 0), (0, cols - b.shape[0])))


def cvae_forward(x, a, eps, params, *, batch_tile=512):
    """Fused CVAE forward. x:(B,input_dim), a:(B,n_attrs), eps:(B,latent_dim).
    Returns (generated_x, generated_a, z_mu, z_logvar) exactly like CVAE.forward."""
    B, D_in = x.shape
    A = a.shape[1]
    L = eps.shape[1]
    H = params["be"].shape[0]

    # Lane-dense / MXU-friendly padded dims.
    Dp, Ap, Lp, Hp = (_ceil_to(d, LANE) for d in (D_in, A, L, H))

    # Batch tiling: large tiles for throughput, sublane-aligned for small batches.
    TB = min(batch_tile, _ceil_to(B, SUBLANE))
    Bp = _ceil_to(B, TB)

    xp = jnp.pad(x, ((0, Bp - B), (0, Dp - D_in)))
    ap = jnp.pad(a, ((0, Bp - B), (0, Ap - A)))
    epsp = jnp.pad(eps, ((0, Bp - B), (0, Lp - L)))

    # Zero-padding weights/biases is correctness preserving for Linear(+ReLU): padded input
    # columns hit zero weight rows, padded output columns get zero weights/bias and are sliced off.
    we_x = _pad2(params["We"][:D_in], Dp, Hp)
    we_a = _pad2(params["We"][D_in:], Ap, Hp)
    be = _pad_bias(params["be"], Hp)
    wmu = _pad2(params["Wmu"], Hp, Lp)
    bmu = _pad_bias(params["bmu"], Lp)
    wvar = _pad2(params["Wvar"], Hp, Lp)
    bvar = _pad_bias(params["bvar"], Lp)
    wd1_z = _pad2(params["Wd1"][:L], Lp, Hp)
    wd1_a = _pad2(params["Wd1"][L:], Ap, Hp)
    bd1 = _pad_bias(params["bd1"], Hp)
    wd2 = _pad2(params["Wd2"], Hp, Dp)
    bd2 = _pad_bias(params["bd2"], Dp)
    wa1 = _pad2(params["Wa1"], Lp, Hp)
    ba1 = _pad_bias(params["ba1"], Hp)
    wa2 = _pad2(params["Wa2"], Hp, Ap)
    ba2 = _pad_bias(params["ba2"], Ap)

    grid = (Bp // TB,)

    def row_spec(cols):  # batch-tiled activations / outputs
        return pl.BlockSpec((TB, cols), lambda i: (i, 0))

    def resident(arr):  # weights/biases stay in VMEM across the whole batch grid
        return pl.BlockSpec(arr.shape, lambda i: (0, 0))

    out_shapes = (
        jax.ShapeDtypeStruct((Bp, Dp), jnp.float32),   # generated_x
        jax.ShapeDtypeStruct((Bp, Ap), jnp.float32),   # generated_a
        jax.ShapeDtypeStruct((Bp, Lp), jnp.float32),   # z_mu
        jax.ShapeDtypeStruct((Bp, Lp), jnp.float32),   # z_logvar
    )

    gen_x, gen_a, mu, logvar = pl.pallas_call(
        cvae_fwd_kernel,
        out_shape=out_shapes,
        grid=grid,
        in_specs=[
            row_spec(Dp), row_spec(Ap), row_spec(Lp),
            resident(we_x), resident(we_a), resident(be),
            resident(wmu), resident(bmu), resident(wvar), resident(bvar),
            resident(wd1_z), resident(wd1_a), resident(bd1), resident(wd2), resident(bd2),
            resident(wa1), resident(ba1), resident(wa2), resident(ba2),
        ],
        out_specs=[row_spec(Dp), row_spec(Ap), row_spec(Lp), row_spec(Lp)],
        compiler_params=pltpu.CompilerParams(
            dimension_semantics=("parallel",)),   # v7x: shard batch tiles across the 2 TCs
    )(xp, ap, epsp, we_x, we_a, be, wmu, bmu, wvar, bvar,
      wd1_z, wd1_a, bd1, wd2, bd2, wa1, ba1, wa2, ba2)

    return (gen_x[:B, :D_in], gen_a[:B, :A], mu[:B, :L], logvar[:B, :L])


def init_linear_params(key, in_features, out_features):
    """PyTorch nn.Linear-style U(-1/sqrt(fan_in), 1/sqrt(fan_in)); stored as (in, out)."""
    k_w, k_b = jax.random.split(key)
    bound = 1.0 / (in_features ** 0.5)
    w = jax.random.uniform(k_w, (in_features, out_features), jnp.float32, -bound, bound)
    b = jax.random.uniform(k_b, (out_features,), jnp.float32, -bound, bound)
    return w, b


def cvae_forward_ref(x, a, eps, p):
    """Pure-JAX reference matching CVAE.forward (same eps injected)."""
    xa = jnp.concatenate([x, a], axis=1)
    h = jnp.maximum(xa @ p["We"] + p["be"], 0.0)
    mu = h @ p["Wmu"] + p["bmu"]
    logvar = h @ p["Wvar"] + p["bvar"]
    x_sample = eps * jnp.exp(logvar * 0.5) + mu
    z = jnp.concatenate([x_sample, a], axis=1)
    hd = jnp.maximum(z @ p["Wd1"] + p["bd1"], 0.0)
    gen_x = hd @ p["Wd2"] + p["bd2"]
    ha = jnp.maximum(x_sample @ p["Wa1"] + p["ba1"], 0.0)
    logits_a = ha @ p["Wa2"] + p["ba2"]
    gen_a = 1.0 / (1.0 + jnp.exp(-logits_a))
    return gen_x, gen_a, mu, logvar


if __name__ == "__main__":
    # Small shapes consistent with the module: CVAE(input_dim=32, hidden=64, latent=16, n_attrs=8)
    input_dim, hidden_dim, latent_dim, n_attrs = 32, 64, 16, 8
    batch = 16

    key = jax.random.PRNGKey(0)
    k_x, k_a, k_eps, k_e, k_mu, k_var, k_d1, k_d2, k_a1, k_a2 = jax.random.split(key, 10)

    x = jax.random.normal(k_x, (batch, input_dim), jnp.float32)
    a = jax.nn.one_hot(
        jax.random.randint(k_a, (batch,), 0, n_attrs), n_attrs, dtype=jnp.float32)
    # torch.randn_like(std) -> host-generated standard-normal noise fed to the kernel.
    eps = jax.random.normal(k_eps, (batch, latent_dim), jnp.float32)

    We, be = init_linear_params(k_e, input_dim + n_attrs, hidden_dim)
    Wmu, bmu = init_linear_params(k_mu, hidden_dim, latent_dim)
    Wvar, bvar = init_linear_params(k_var, hidden_dim, latent_dim)
    Wd1, bd1 = init_linear_params(k_d1, latent_dim + n_attrs, hidden_dim)
    Wd2, bd2 = init_linear_params(k_d2, hidden_dim, input_dim)
    Wa1, ba1 = init_linear_params(k_a1, latent_dim, hidden_dim)
    Wa2, ba2 = init_linear_params(k_a2, hidden_dim, n_attrs)

    params = dict(We=We, be=be, Wmu=Wmu, bmu=bmu, Wvar=Wvar, bvar=bvar,
                  Wd1=Wd1, bd1=bd1, Wd2=Wd2, bd2=bd2,
                  Wa1=Wa1, ba1=ba1, Wa2=Wa2, ba2=ba2)

    outs = cvae_forward(x, a, eps, params)
    outs = jax.block_until_ready(outs)
    gen_x, gen_a, z_mu, z_logvar = outs

    ref_gen_x, ref_gen_a, ref_mu, ref_logvar = cvae_forward_ref(x, a, eps, params)

    assert gen_x.shape == (batch, input_dim)
    assert gen_a.shape == (batch, n_attrs)
    assert z_mu.shape == (batch, latent_dim)
    assert z_logvar.shape == (batch, latent_dim)
    assert jnp.allclose(gen_x, ref_gen_x, atol=1e-4, rtol=1e-4)
    assert jnp.allclose(gen_a, ref_gen_a, atol=1e-4, rtol=1e-4)
    assert jnp.allclose(z_mu, ref_mu, atol=1e-4, rtol=1e-4)
    assert jnp.allclose(z_logvar, ref_logvar, atol=1e-4, rtol=1e-4)

    print("KERNEL_OK")
</pallas_src>

<mosaic_0001>
module attributes {stable_mosaic.version = 11 : i64} {
  func.func @cvae_fwd_kernel(%arg0: i32, %arg1: memref<16x128xf32, #tpu.memory_space<vmem>>, %arg2: memref<16x128xf32, #tpu.memory_space<vmem>>, %arg3: memref<16x128xf32, #tpu.memory_space<vmem>>, %arg4: memref<128x128xf32, #tpu.memory_space<vmem>>, %arg5: memref<128x128xf32, #tpu.memory_space<vmem>>, %arg6: memref<1x128xf32, #tpu.memory_space<vmem>>, %arg7: memref<128x128xf32, #tpu.memory_space<vmem>>, %arg8: memref<1x128xf32, #tpu.memory_space<vmem>>, %arg9: memref<128x128xf32, #tpu.memory_space<vmem>>, %arg10: memref<1x128xf32, #tpu.memory_space<vmem>>, %arg11: memref<128x128xf32, #tpu.memory_space<vmem>>, %arg12: memref<128x128xf32, #tpu.memory_space<vmem>>, %arg13: memref<1x128xf32, #tpu.memory_space<vmem>>, %arg14: memref<128x128xf32, #tpu.memory_space<vmem>>, %arg15: memref<1x128xf32, #tpu.memory_space<vmem>>, %arg16: memref<128x128xf32, #tpu.memory_space<vmem>>, %arg17: memref<1x128xf32, #tpu.memory_space<vmem>>, %arg18: memref<128x128xf32, #tpu.memory_space<vmem>>, %arg19: memref<1x128xf32, #tpu.memory_space<vmem>>, %arg20: memref<16x128xf32, #tpu.memory_space<vmem>>, %arg21: memref<16x128xf32, #tpu.memory_space<vmem>>, %arg22: memref<16x128xf32, #tpu.memory_space<vmem>>, %arg23: memref<16x128xf32, #tpu.memory_space<vmem>>) attributes {dimension_semantics = [#tpu.dimension_semantics<parallel>], iteration_bounds = array<i64: 1>, scalar_prefetch = 0 : i64, scratch_operands = 0 : i64, tpu.core_type = #tpu.core_type<tc>, window_params = [{transform_indices = @transform_0, window_bounds = array<i64: 16, 128>}, {transform_indices = @transform_1, window_bounds = array<i64: 16, 128>}, {transform_indices = @transform_2, window_bounds = array<i64: 16, 128>}, {pipeline_mode = #tpu.pipeline_mode<synchronous>, transform_indices = @transform_3, window_bounds = array<i64: 128, 128>}, {pipeline_mode = #tpu.pipeline_mode<synchronous>, transform_indices = @transform_4, window_bounds = array<i64: 128, 128>}, {pipeline_mode = #tpu.pipeline_mode<synchronous>, transform_indices = @transform_5, window_bounds = array<i64: 1, 128>}, {pipeline_mode = #tpu.pipeline_mode<synchronous>, transform_indices = @transform_6, window_bounds = array<i64: 128, 128>}, {pipeline_mode = #tpu.pipeline_mode<synchronous>, transform_indices = @transform_7, window_bounds = array<i64: 1, 128>}, {pipeline_mode = #tpu.pipeline_mode<synchronous>, transform_indices = @transform_8, window_bounds = array<i64: 128, 128>}, {pipeline_mode = #tpu.pipeline_mode<synchronous>, transform_indices = @transform_9, window_bounds = array<i64: 1, 128>}, {pipeline_mode = #tpu.pipeline_mode<synchronous>, transform_indices = @transform_10, window_bounds = array<i64: 128, 128>}, {pipeline_mode = #tpu.pipeline_mode<synchronous>, transform_indices = @transform_11, window_bounds = array<i64: 128, 128>}, {pipeline_mode = #tpu.pipeline_mode<synchronous>, transform_indices = @transform_12, window_bounds = array<i64: 1, 128>}, {pipeline_mode = #tpu.pipeline_mode<synchronous>, transform_indices = @transform_13, window_bounds = array<i64: 128, 128>}, {pipeline_mode = #tpu.pipeline_mode<synchronous>, transform_indices = @transform_14, window_bounds = array<i64: 1, 128>}, {pipeline_mode = #tpu.pipeline_mode<synchronous>, transform_indices = @transform_15, window_bounds = array<i64: 128, 128>}, {pipeline_mode = #tpu.pipeline_mode<synchronous>, transform_indices = @transform_16, window_bounds = array<i64: 1, 128>}, {pipeline_mode = #tpu.pipeline_mode<synchronous>, transform_indices = @transform_17, window_bounds = array<i64: 128, 128>}, {pipeline_mode = #tpu.pipeline_mode<synchronous>, transform_indices = @transform_18, window_bounds = array<i64: 1, 128>}, {transform_indices = @transform_19, window_bounds = array<i64: 16, 128>}, {transform_indices = @transform_20, window_bounds = array<i64: 16, 128>}, {transform_indices = @transform_21, window_bounds = array<i64: 16, 128>}, {transform_indices = @transform_22, window_bounds = array<i64: 16, 128>}]} {
    %c0 = arith.constant 0 : index
    %c0_0 = arith.constant 0 : index
    %0 = vector.load %arg1[%c0, %c0_0] : memref<16x128xf32, #tpu.memory_space<vmem>>, vector<16x128xf32>
    %c0_1 = arith.constant 0 : index
    %c0_2 = arith.constant 0 : index
    %1 = vector.load %arg2[%c0_1, %c0_2] : memref<16x128xf32, #tpu.memory_space<vmem>>, vector<16x128xf32>
    %c0_3 = arith.constant 0 : index
    %c0_4 = arith.constant 0 : index
    %2 = vector.load %arg4[%c0_3, %c0_4] : memref<128x128xf32, #tpu.memory_space<vmem>>, vector<128x128xf32>
    %cst = arith.constant dense<0.000000e+00> : vector<16x128xf32>
    %3 = tpu.matmul %0, %2, %cst {dimension_numbers = #tpu.dot_dimension_numbers<[1], [0], [0], [1], [0, 0, 1, 1], [], []>} : vector<16x128xf32>, vector<128x128xf32>, vector<16x128xf32> -> vector<16x128xf32>
    %c0_5 = arith.constant 0 : index
    %c0_6 = arith.constant 0 : index
    %4 = vector.load %arg5[%c0_5, %c0_6] : memref<128x128xf32, #tpu.memory_space<vmem>>, vector<128x128xf32>
    %cst_7 = arith.constant dense<0.000000e+00> : vector<16x128xf32>
    %5 = tpu.matmul %1, %4, %cst_7 {dimension_numbers = #tpu.dot_dimension_numbers<[1], [0], [0], [1], [0, 0, 1, 1], [], []>} : vector<16x128xf32>, vector<128x128xf32>, vector<16x128xf32> -> vector<16x128xf32>
    %6 = arith.addf %3, %5 : vector<16x128xf32>
    %c0_8 = arith.constant 0 : index
    %c0_9 = arith.constant 0 : index
    %7 = vector.load %arg6[%c0_8, %c0_9] : memref<1x128xf32, #tpu.memory_space<vmem>>, vector<1x128xf32>
    %8 = vector.broadcast %7 : vector<1x128xf32> to vector<16x128xf32>
    %9 = arith.addf %6, %8 : vector<16x128xf32>
    %cst_10 = arith.constant 0.000000e+00 : f32
    %10 = vector.broadcast %cst_10 : f32 to vector<16x128xf32>
    %11 = arith.maximumf %9, %10 : vector<16x128xf32>
    %c0_11 = arith.constant 0 : index
    %c0_12 = arith.constant 0 : index
    %12 = vector.load %arg7[%c0_11, %c0_12] : memref<128x128xf32, #tpu.memory_space<vmem>>, vector<128x128xf32>
    %cst_13 = arith.constant dense<0.000000e+00> : vector<16x128xf32>
    %13 = tpu.matmul %11, %12, %cst_13 {dimension_numbers = #tpu.dot_dimension_numbers<[1], [0], [0], [1], [0, 0, 1, 1], [], []>} : vector<16x128xf32>, vector<128x128xf32>, vector<16x128xf32> -> vector<16x128xf32>
    %c0_14 = arith.constant 0 : index
    %c0_15 = arith.constant 0 : index
    %14 = vector.load %arg8[%c0_14, %c0_15] : memref<1x128xf32, #tpu.memory_space<vmem>>, vector<1x128xf32>
    %15 = vector.broadcast %14 : vector<1x128xf32> to vector<16x128xf32>
    %16 = arith.addf %13, %15 : vector<16x128xf32>
    %c0_16 = arith.constant 0 : index
    %c0_17 = arith.constant 0 : index
    %17 = vector.load %arg9[%c0_16, %c0_17] : memref<128x128xf32, #tpu.memory_space<vmem>>, vector<128x128xf32>
    %cst_18 = arith.constant dense<0.000000e+00> : vector<16x128xf32>
    %18 = tpu.matmul %11, %17, %cst_18 {dimension_numbers = #tpu.dot_dimension_numbers<[1], [0], [0], [1], [0, 0, 1, 1], [], []>} : vector<16x128xf32>, vector<128x128xf32>, vector<16x128xf32> -> vector<16x128xf32>
    %c0_19 = arith.constant 0 : index
    %c0_20 = arith.constant 0 : index
    %19 = vector.load %arg10[%c0_19, %c0_20] : memref<1x128xf32, #tpu.memory_space<vmem>>, vector<1x128xf32>
    %20 = vector.broadcast %19 : vector<1x128xf32> to vector<16x128xf32>
    %21 = arith.addf %18, %20 : vector<16x128xf32>
    %cst_21 = arith.constant 5.000000e-01 : f32
    %22 = vector.broadcast %cst_21 : f32 to vector<16x128xf32>
    %23 = arith.mulf %21, %22 : vector<16x128xf32>
    %24 = math.exp %23 : vector<16x128xf32>
    %c0_22 = arith.constant 0 : index
    %c0_23 = arith.constant 0 : index
    %25 = vector.load %arg3[%c0_22, %c0_23] : memref<16x128xf32, #tpu.memory_space<vmem>>, vector<16x128xf32>
    %26 = arith.mulf %25, %24 : vector<16x128xf32>
    %27 = arith.addf %26, %16 : vector<16x128xf32>
    %c0_24 = arith.constant 0 : index
    %c0_25 = arith.constant 0 : index
    %28 = vector.load %arg11[%c0_24, %c0_25] : memref<128x128xf32, #tpu.memory_space<vmem>>, vector<128x128xf32>
    %cst_26 = arith.constant dense<0.000000e+00> : vector<16x128xf32>
    %29 = tpu.matmul %27, %28, %cst_26 {dimension_numbers = #tpu.dot_dimension_numbers<[1], [0], [0], [1], [0, 0, 1, 1], [], []>} : vector<16x128xf32>, vector<128x128xf32>, vector<16x128xf32> -> vector<16x128xf32>
    %c0_27 = arith.constant 0 : index
    %c0_28 = arith.constant 0 : index
    %30 = vector.load %arg12[%c0_27, %c0_28] : memref<128x128xf32, #tpu.memory_space<vmem>>, vector<128x128xf32>
    %cst_29 = arith.constant dense<0.000000e+00> : vector<16x128xf32>
    %31 = tpu.matmul %1, %30, %cst_29 {dimension_numbers = #tpu.dot_dimension_numbers<[1], [0], [0], [1], [0, 0, 1, 1], [], []>} : vector<16x128xf32>, vector<128x128xf32>, vector<16x128xf32> -> vector<16x128xf32>
    %32 = arith.addf %29, %31 : vector<16x128xf32>
    %c0_30 = arith.constant 0 : index
    %c0_31 = arith.constant 0 : index
    %33 = vector.load %arg13[%c0_30, %c0_31] : memref<1x128xf32, #tpu.memory_space<vmem>>, vector<1x128xf32>
    %34 = vector.broadcast %33 : vector<1x128xf32> to vector<16x128xf32>
    %35 = arith.addf %32, %34 : vector<16x128xf32>
    %cst_32 = arith.constant 0.000000e+00 : f32
    %36 = vector.broadcast %cst_32 : f32 to vector<16x128xf32>
    %37 = arith.maximumf %35, %36 : vector<16x128xf32>
    %c0_33 = arith.constant 0 : index
    %c0_34 = arith.constant 0 : index
    %38 = vector.load %arg14[%c0_33, %c0_34] : memref<128x128xf32, #tpu.memory_space<vmem>>, vector<128x128xf32>
    %cst_35 = arith.constant dense<0.000000e+00> : vector<16x128xf32>
    %39 = tpu.matmul %37, %38, %cst_35 {dimension_numbers = #tpu.dot_dimension_numbers<[1], [0], [0], [1], [0, 0, 1, 1], [], []>} : vector<16x128xf32>, vector<128x128xf32>, vector<16x128xf32> -> vector<16x128xf32>
    %c0_36 = arith.constant 0 : index
    %c0_37 = arith.constant 0 : index
    %40 = vector.load %arg15[%c0_36, %c0_37] : memref<1x128xf32, #tpu.memory_space<vmem>>, vector<1x128xf32>
    %41 = vector.broadcast %40 : vector<1x128xf32> to vector<16x128xf32>
    %42 = arith.addf %39, %41 : vector<16x128xf32>
    %c0_38 = arith.constant 0 : index
    %c0_39 = arith.constant 0 : index
    %43 = vector.load %arg16[%c0_38, %c0_39] : memref<128x128xf32, #tpu.memory_space<vmem>>, vector<128x128xf32>
    %cst_40 = arith.constant dense<0.000000e+00> : vector<16x128xf32>
    %44 = tpu.matmul %27, %43, %cst_40 {dimension_numbers = #tpu.dot_dimension_numbers<[1], [0], [0], [1], [0, 0, 1, 1], [], []>} : vector<16x128xf32>, vector<128x128xf32>, vector<16x128xf32> -> vector<16x128xf32>
    %c0_41 = arith.constant 0 : index
    %c0_42 = arith.constant 0 : index
    %45 = vector.load %arg17[%c0_41, %c0_42] : memref<1x128xf32, #tpu.memory_space<vmem>>, vector<1x128xf32>
    %46 = vector.broadcast %45 : vector<1x128xf32> to vector<16x128xf32>
    %47 = arith.addf %44, %46 : vector<16x128xf32>
    %cst_43 = arith.constant 0.000000e+00 : f32
    %48 = vector.broadcast %cst_43 : f32 to vector<16x128xf32>
    %49 = arith.maximumf %47, %48 : vector<16x128xf32>
    %c0_44 = arith.constant 0 : index
    %c0_45 = arith.constant 0 : index
    %50 = vector.load %arg18[%c0_44, %c0_45] : memref<128x128xf32, #tpu.memory_space<vmem>>, vector<128x128xf32>
    %cst_46 = arith.constant dense<0.000000e+00> : vector<16x128xf32>
    %51 = tpu.matmul %49, %50, %cst_46 {dimension_numbers = #tpu.dot_dimension_numbers<[1], [0], [0], [1], [0, 0, 1, 1], [], []>} : vector<16x128xf32>, vector<128x128xf32>, vector<16x128xf32> -> vector<16x128xf32>
    %c0_47 = arith.constant 0 : index
    %c0_48 = arith.constant 0 : index
    %52 = vector.load %arg19[%c0_47, %c0_48] : memref<1x128xf32, #tpu.memory_space<vmem>>, vector<1x128xf32>
    %53 = vector.broadcast %52 : vector<1x128xf32> to vector<16x128xf32>
    %54 = arith.addf %51, %53 : vector<16x128xf32>
    %cst_49 = arith.constant 0.000000e+00 : f32
    %55 = vector.broadcast %cst_49 : f32 to vector<16x128xf32>
    %56 = arith.subf %55, %54 : vector<16x128xf32>
    %57 = math.exp %56 : vector<16x128xf32>
    %cst_50 = arith.constant 1.000000e+00 : f32
    %58 = vector.broadcast %cst_50 : f32 to vector<16x128xf32>
    %59 = arith.addf %58, %57 : vector<16x128xf32>
    %cst_51 = arith.constant 1.000000e+00 : f32
    %60 = vector.broadcast %cst_51 : f32 to vector<16x128xf32>
    %61 = arith.divf %60, %59 : vector<16x128xf32>
    %c0_52 = arith.constant 0 : index
    %c0_53 = arith.constant 0 : index
    %62 = vector.load %arg20[%c0_52, %c0_53] : memref<16x128xf32, #tpu.memory_space<vmem>>, vector<16x128xf32>
    tpu.vector_store %arg20[%c0_52, %c0_53], %42 {strides = array<i32>} : memref<16x128xf32, #tpu.memory_space<vmem>>, vector<16x128xf32>,
    %c0_54 = arith.constant 0 : index
    %c0_55 = arith.constant 0 : index
    %63 = vector.load %arg21[%c0_54, %c0_55] : memref<16x128xf32, #tpu.memory_space<vmem>>, vector<16x128xf32>
    tpu.vector_store %arg21[%c0_54, %c0_55], %61 {strides = array<i32>} : memref<16x128xf32, #tpu.memory_space<vmem>>, vector<16x128xf32>,
    %c0_56 = arith.constant 0 : index
    %c0_57 = arith.constant 0 : index
    %64 = vector.load %arg22[%c0_56, %c0_57] : memref<16x128xf32, #tpu.memory_space<vmem>>, vector<16x128xf32>
    tpu.vector_store %arg22[%c0_56, %c0_57], %16 {strides = array<i32>} : memref<16x128xf32, #tpu.memory_space<vmem>>, vector<16x128xf32>,
    %c0_58 = arith.constant 0 : index
    %c0_59 = arith.constant 0 : index
    %65 = vector.load %arg23[%c0_58, %c0_59] : memref<16x128xf32, #tpu.memory_space<vmem>>, vector<16x128xf32>
    tpu.vector_store %arg23[%c0_58, %c0_59], %21 {strides = array<i32>} : memref<16x128xf32, #tpu.memory_space<vmem>>, vector<16x128xf32>,
    return
  }
  func.func @transform_0(%arg0: i32) -> (i32, i32) {
    %c0_i32 = arith.constant 0 : i32
    %c0_i32_0 = arith.constant 0 : i32
    return %arg0, %c0_i32 : i32, i32
  }
  func.func @transform_1(%arg0: i32) -> (i32, i32) {
    %c0_i32 = arith.constant 0 : i32
    %c0_i32_0 = arith.constant 0 : i32
    return %arg0, %c0_i32 : i32, i32
  }
  func.func @transform_2(%arg0: i32) -> (i32, i32) {
    %c0_i32 = arith.constant 0 : i32
    %c0_i32_0 = arith.constant 0 : i32
    return %arg0, %c0_i32 : i32, i32
  }
  func.func @transform_3(%arg0: i32) -> (i32, i32) {
    %c0_i32 = arith.constant 0 : i32
    %c0_i32_0 = arith.constant 0 : i32
    %c0_i32_1 = arith.constant 0 : i32
    return %c0_i32, %c0_i32_0 : i32, i32
  }
  func.func @transform_4(%arg0: i32) -> (i32, i32) {
    %c0_i32 = arith.constant 0 : i32
    %c0_i32_0 = arith.constant 0 : i32
    %c0_i32_1 = arith.constant 0 : i32
    return %c0_i32, %c0_i32_0 : i32, i32
  }
  func.func @transform_5(%arg0: i32) -> (i32, i32) {
    %c0_i32 = arith.constant 0 : i32
    %c0_i32_0 = arith.constant 0 : i32
    %c0_i32_1 = arith.constant 0 : i32
    return %c0_i32, %c0_i32_0 : i32, i32
  }
  func.func @transform_6(%arg0: i32) -> (i32, i32) {
    %c0_i32 = arith.constant 0 : i32
    %c0_i32_0 = arith.constant 0 : i32
    %c0_i32_1 = arith.constant 0 : i32
    return %c0_i32, %c0_i32_0 : i32, i32
  }
  func.func @transform_7(%arg0: i32) -> (i32, i32) {
    %c0_i32 = arith.constant 0 : i32
    %c0_i32_0 = arith.constant 0 : i32
    %c0_i32_1 = arith.constant 0 : i32
    return %c0_i32, %c0_i32_0 : i32, i32
  }
  func.func @transform_8(%arg0: i32) -> (i32, i32) {
    %c0_i32 = arith.constant 0 : i32
    %c0_i32_0 = arith.constant 0 : i32
    %c0_i32_1 = arith.constant 0 : i32
    return %c0_i32, %c0_i32_0 : i32, i32
  }
  func.func @transform_9(%arg0: i32) -> (i32, i32) {
    %c0_i32 = arith.constant 0 : i32
    %c0_i32_0 = arith.constant 0 : i32
    %c0_i32_1 = arith.constant 0 : i32
    return %c0_i32, %c0_i32_0 : i32, i32
  }
  func.func @transform_10(%arg0: i32) -> (i32, i32) {
    %c0_i32 = arith.constant 0 : i32
    %c0_i32_0 = arith.constant 0 : i32
    %c0_i32_1 = arith.constant 0 : i32
    return %c0_i32, %c0_i32_0 : i32, i32
  }
  func.func @transform_11(%arg0: i32) -> (i32, i32) {
    %c0_i32 = arith.constant 0 : i32
    %c0_i32_0 = arith.constant 0 : i32
    %c0_i32_1 = arith.constant 0 : i32
    return %c0_i32, %c0_i32_0 : i32, i32
  }
  func.func @transform_12(%arg0: i32) -> (i32, i32) {
    %c0_i32 = arith.constant 0 : i32
    %c0_i32_0 = arith.constant 0 : i32
    %c0_i32_1 = arith.constant 0 : i32
    return %c0_i32, %c0_i32_0 : i32, i32
  }
  func.func @transform_13(%arg0: i32) -> (i32, i32) {
    %c0_i32 = arith.constant 0 : i32
    %c0_i32_0 = arith.constant 0 : i32
    %c0_i32_1 = arith.constant 0 : i32
    return %c0_i32, %c0_i32_0 : i32, i32
  }
  func.func @transform_14(%arg0: i32) -> (i32, i32) {
    %c0_i32 = arith.constant 0 : i32
    %c0_i32_0 = arith.constant 0 : i32
    %c0_i32_1 = arith.constant 0 : i32
    return %c0_i32, %c0_i32_0 : i32, i32
  }
  func.func @transform_15(%arg0: i32) -> (i32, i32) {
    %c0_i32 = arith.constant 0 : i32
    %c0_i32_0 = arith.constant 0 : i32
    %c0_i32_1 = arith.constant 0 : i32
    return %c0_i32, %c0_i32_0 : i32, i32
  }
  func.func @transform_16(%arg0: i32) -> (i32, i32) {
    %c0_i32 = arith.constant 0 : i32
    %c0_i32_0 = arith.constant 0 : i32
    %c0_i32_1 = arith.constant 0 : i32
    return %c0_i32, %c0_i32_0 : i32, i32
  }
  func.func @transform_17(%arg0: i32) -> (i32, i32) {
    %c0_i32 = arith.constant 0 : i32
    %c0_i32_0 = arith.constant 0 : i32
    %c0_i32_1 = arith.constant 0 : i32
    return %c0_i32, %c0_i32_0 : i32, i32
  }
  func.func @transform_18(%arg0: i32) -> (i32, i32) {
    %c0_i32 = arith.constant 0 : i32
    %c0_i32_0 = arith.constant 0 : i32
    %c0_i32_1 = arith.constant 0 : i32
    return %c0_i32, %c0_i32_0 : i32, i32
  }
  func.func @transform_19(%arg0: i32) -> (i32, i32) {
    %c0_i32 = arith.constant 0 : i32
    %c0_i32_0 = arith.constant 0 : i32
    return %arg0, %c0_i32 : i32, i32
  }
  func.func @transform_20(%arg0: i32) -> (i32, i32) {
    %c0_i32 = arith.constant 0 : i32
    %c0_i32_0 = arith.constant 0 : i32
    return %arg0, %c0_i32 : i32, i32
  }
  func.func @transform_21(%arg0: i32) -> (i32, i32) {
    %c0_i32 = arith.constant 0 : i32
    %c0_i32_0 = arith.constant 0 : i32
    return %arg0, %c0_i32 : i32, i32
  }
  func.func @transform_22(%arg0: i32) -> (i32, i32) {
    %c0_i32 = arith.constant 0 : i32
    %c0_i32_0 = arith.constant 0 : i32
    return %arg0, %c0_i32 : i32, i32
  }
}

</mosaic_0001>

<bundles_post_ra>
// kernel: tpu_custom_call.1
= control target key start
LH: loop header
LB: loop body
LE: loop exit
PB: predicated region body
PF: predicated region fallthrough
CT: control target
= control target key end

     0   :  { %s2845_s0 = inlined_call_operand.hbm [shape: f32[16,128], index: 0, kind: input, shape index: {}]   ;;  %s2846_s1 = inlined_call_operand.hbm [shape: f32[16,128], index: 1, kind: input, shape index: {}]   ;;  %s2847_s2 = inlined_call_operand.hbm [shape: f32[16,128], index: 2, kind: input, shape index: {}]   ;;  %s2848_s3 = inlined_call_operand.hbm [shape: f32[128,128], index: 3, kind: input, shape index: {}]   ;;  %s2849_s4 = inlined_call_operand.hbm [shape: f32[128,128], index: 4, kind: input, shape index: {}]   ;;  %s2850_s5 = inlined_call_operand.vmem [shape: f32[1,128], index: 5, kind: input, shape index: {}]   ;;  %s2851_s6 = inlined_call_operand.hbm [shape: f32[128,128], index: 6, kind: input, shape index: {}]   ;;  %s2852_s7 = inlined_call_operand.vmem [shape: f32[1,128], index: 7, kind: input, shape index: {}]   ;;  %s2853_s8 = inlined_call_operand.hbm [shape: f32[128,128], index: 8, kind: input, shape index: {}]   ;;  %s2854_s9 = inlined_call_operand.vmem [shape: f32[1,128], index: 9, kind: input, shape index: {}]   ;;  %s2855_s10 = inlined_call_operand.hbm [shape: f32[128,128], index: 10, kind: input, shape index: {}]   ;;  %s2856_s11 = inlined_call_operand.hbm [shape: f32[128,128], index: 11, kind: input, shape index: {}]   ;;  %s2857_s12 = inlined_call_operand.vmem [shape: f32[1,128], index: 12, kind: input, shape index: {}]   ;;  %s2858_s13 = inlined_call_operand.hbm [shape: f32[128,128], index: 13, kind: input, shape index: {}]   ;;  %s2859_s14 = inlined_call_operand.vmem [shape: f32[1,128], index: 14, kind: input, shape index: {}]   ;;  %s2860_s15 = inlined_call_operand.hbm [shape: f32[128,128], index: 15, kind: input, shape index: {}]   ;;  %s2861_s16 = inlined_call_operand.vmem [shape: f32[1,128], index: 16, kind: input, shape index: {}]   ;;  %s2862_s17 = inlined_call_operand.hbm [shape: f32[128,128], index: 17, kind: input, shape index: {}]   ;;  %s2863_s18 = inlined_call_operand.vmem [shape: f32[1,128], index: 18, kind: input, shape index: {}]   ;;  %s2864_s19 = inlined_call_operand.hbm [shape: f32[16,128], index: 19, kind: output, shape index: {0}]   ;;  %s2865_s20 = inlined_call_operand.hbm [shape: f32[16,128], index: 20, kind: output, shape index: {1}]   ;;  %s2866_s21 = inlined_call_operand.hbm [shape: f32[16,128], index: 21, kind: output, shape index: {2}]   ;;  %s2867_s22 = inlined_call_operand.hbm [shape: f32[16,128], index: 22, kind: output, shape index: {3}]  }
   0x1   :  { %2876 = sst [smem:[#allocation38_spill]] %s2845_s0 }
   0x2   :  { %2877 = sst [smem:[#allocation39_spill]] %s2846_s1 }
   0x3   :  { %2878 = sst [smem:[#allocation40_spill]] %s2847_s2 }
   0x4   :  { %2879 = sst [smem:[#allocation41_spill]] %s2848_s3 }
   0x5   :  { %2880 = sst [smem:[#allocation42_spill]] %s2849_s4 }
   0x6   :  { %2881 = sst [smem:[#allocation43_spill]] %s2850_s5 }
   0x7   :  { %2882 = sst [smem:[#allocation44_spill]] %s2851_s6 }
   0x8   :  { %2883 = sst [smem:[#allocation45_spill]] %s2863_s18 }
   0x9   :  { %2884 = sst [smem:[#allocation46_spill]] %s2865_s20 }
   0xa   :  { %2885 = sst [smem:[#allocation47_spill]] %s2866_s21 }
   0xb   :  { %28 = vsyncpa [#allocation3], 0 }
   0xc   :  { %29 = vsyncpa [#allocation6], 0 }
   0xd   :  { %30 = vsyncpa [#allocation9], 0 }
   0xe   :  { %31 = vsyncpa [#allocation12], 0 }
   0xf   :  { %32 = vsyncpa [#allocation15], 0 }
  0x10   :  { %33 = vsyncpa [#allocation18], 0 }
  0x11   :  { %34 = vsyncpa [#allocation21], 0 }
  0x12   :  { %35 = vsyncpa [#allocation4], 0 }
  0x13   :  { %36 = vsyncpa [#allocation24], 0 }
  0x14   :  { %37 = vsyncpa [#allocation27], 0  ;;  %s2394_s3 = smov [#allocation5]   ;;  %s2395_s29 = smov [#allocation8]  }
  0x15   :  { %s55_s28 = sshll.u32 %s2394_s3, 4  ;;  %s79_s30 = sshll.u32 %s2395_s29, 4  ;;  %s56_s28 = int_to_ptr.vmem [resolvable:$true] %s55_s28  ;;  %s2527_s30 = int_to_ptr.vmem [resolvable:$true] %s79_s30 }
  0x16   :  { %s2886_s23 = sld [smem:[#allocation39_spill]] }
  0x1c   :  { %s2022_s1 = scalar_lea.hbm %s2886_s23, 256 }
  0x1d   :  { %p2023_p0 = scmp.ne.s32.totalorder %s2886_s23, %s2022_s1  ;;  %p2026_p1 = scmp.lt.u32.totalorder %s2022_s1, %s2886_s23 }
  0x1f   :  { %p2028_p2 = pnand %p2026_p1, %p2023_p0 }
  0x21   :  { %2031 = shalt.err (!%p2028_p2)
}
  0x22   :  { %s2032_s26 = scalar_lea.vmem %s56_s28, 256  ;;  %p2037_p4 = scmp.lt.s32.totalorder %s56_s28, %s56_s28 }
  0x23   :  { %p2033_p3 = scmp.ne.s32.totalorder %s56_s28, %s2032_s26  ;;  %p2038_p5 = scmp.lt.s32.totalorder %s2032_s26, %s2032_s26 }
  0x25   :  { %p2039_p6 = por %p2038_p5, %p2037_p4 }
  0x27   :  { %p2040_p7 = pnand %p2039_p6, %p2033_p3 }
  0x29   :  { %2043 = shalt.err (!%p2040_p7)
}
  0x2a   :  { %s2396_s2 = smov 128   ;;  %s2397_s27 = smov 8  }
  0x2b   :  { %61 = dma.hbm_to_vmem [thread:$0]  %s2886_s23, 256, %s56_s28, [#allocation6], %s2396_s2, %s2396_s2, %s2397_s27  }
  0x2c   :  { %s2887_s1 = sld [smem:[#allocation41_spill]] }
  0x32   :  { %s2044_s5 = scalar_lea.hbm %s2887_s1, 2048 }
  0x33   :  { %p2045_p8 = scmp.ne.s32.totalorder %s2887_s1, %s2044_s5  ;;  %p2048_p9 = scmp.lt.u32.totalorder %s2044_s5, %s2887_s1 }
  0x35   :  { %p2050_p10 = pnand %p2048_p9, %p2045_p8 }
  0x37   :  { %2053 = shalt.err (!%p2050_p10)
}
  0x38   :  { %s2054_s21 = scalar_lea.vmem %s2527_s30, 2048  ;;  %p2059_p12 = scmp.lt.s32.totalorder %s2527_s30, %s2527_s30 }
  0x39   :  { %p2055_p11 = scmp.ne.s32.totalorder %s2527_s30, %s2054_s21  ;;  %p2060_p13 = scmp.lt.s32.totalorder %s2054_s21, %s2054_s21 }
  0x3b   :  { %p2061_p0 = por %p2060_p13, %p2059_p12 }
  0x3d   :  { %p2062_p1 = pnand %p2061_p0, %p2055_p11 }
  0x3f   :  { %2065 = shalt.err (!%p2062_p1)
}
  0x40   :  { %85 = dma.hbm_to_vmem [thread:$0]  %s2887_s1, 2048, %s2527_s30, [#allocation9], %s2396_s2, %s2396_s2, %s2397_s27  }
  0x41   :  { %s2398_s3 = smov [#allocation11]   ;;  %s2399_s4 = smov [#allocation14]  }
  0x42   :  { %s105_s29 = sshll.u32 %s2398_s3, 4  ;;  %s133_s0 = sshll.u32 %s2399_s4, 4  ;;  %s106_s29 = int_to_ptr.vmem [resolvable:$true] %s105_s29  ;;  %s2564_s0 = int_to_ptr.vmem [resolvable:$true] %s133_s0 }
  0x43   :  { %s2888_s24 = sld [smem:[#allocation44_spill]] }
  0x49   :  { %s2066_s6 = scalar_lea.hbm %s2888_s24, 2048 }
  0x4a   :  { %p2067_p2 = scmp.ne.s32.totalorder %s2888_s24, %s2066_s6  ;;  %p2070_p3 = scmp.lt.u32.totalorder %s2066_s6, %s2888_s24 }
  0x4c   :  { %p2072_p4 = pnand %p2070_p3, %p2067_p2 }
  0x4e   :  { %2075 = shalt.err (!%p2072_p4)
}
  0x4f   :  { %s2076_s30 = scalar_lea.vmem %s106_s29, 2048  ;;  %p2081_p6 = scmp.lt.s32.totalorder %s106_s29, %s106_s29 }
  0x50   :  { %p2077_p5 = scmp.ne.s32.totalorder %s106_s29, %s2076_s30  ;;  %p2082_p7 = scmp.lt.s32.totalorder %s2076_s30, %s2076_s30 }
  0x52   :  { %p2083_p8 = por %p2082_p7, %p2081_p6 }
  0x54   :  { %p2084_p9 = pnand %p2083_p8, %p2077_p5 }
  0x56   :  { %2087 = shalt.err (!%p2084_p9)
}
  0x57   :  { %111 = dma.hbm_to_vmem [thread:$0]  %s2888_s24, 2048, %s106_s29, [#allocation12], %s2396_s2, %s2396_s2, %s2397_s27  }
  0x58   :  { %s2088_s18 = scalar_lea.hbm %s2855_s10, 2048 }
  0x59   :  { %p2089_p10 = scmp.ne.s32.totalorder %s2855_s10, %s2088_s18  ;;  %p2092_p11 = scmp.lt.u32.totalorder %s2088_s18, %s2855_s10 }
  0x5b   :  { %p2094_p12 = pnand %p2092_p11, %p2089_p10 }
  0x5d   :  { %2097 = shalt.err (!%p2094_p12)
}
  0x5e   :  { %s2098_s6 = scalar_lea.vmem %s2564_s0, 2048  ;;  %p2103_p0 = scmp.lt.s32.totalorder %s2564_s0, %s2564_s0 }
  0x5f   :  { %p2099_p13 = scmp.ne.s32.totalorder %s2564_s0, %s2098_s6  ;;  %p2104_p1 = scmp.lt.s32.totalorder %s2098_s6, %s2098_s6 }
  0x61   :  { %p2105_p2 = por %p2104_p1, %p2103_p0 }
  0x63   :  { %p2106_p3 = pnand %p2105_p2, %p2099_p13 }
  0x65   :  { %2109 = shalt.err (!%p2106_p3)
}
  0x66   :  { %139 = dma.hbm_to_vmem [thread:$0]  %s2855_s10, 2048, %s2564_s0, [#allocation15], %s2396_s2, %s2396_s2, %s2397_s27  }
  0x67   :  { %s2400_s25 = smov [#allocation17]   ;;  %s2401_s30 = smov [#allocation2]  }
  0x68   :  { %s159_s26 = sshll.u32 %s2400_s25, 4  ;;  %s43_s1 = sshll.u32 %s2401_s30, 4  ;;  %s160_s26 = int_to_ptr.vmem [resolvable:$true] %s159_s26  ;;  %s2601_s1 = int_to_ptr.vmem [resolvable:$true] %s43_s1 }
  0x69   :  { %s2110_s3 = scalar_lea.hbm %s2858_s13, 2048 }
  0x6a   :  { %p2111_p4 = scmp.ne.s32.totalorder %s2858_s13, %s2110_s3  ;;  %p2114_p5 = scmp.lt.u32.totalorder %s2110_s3, %s2858_s13 }
  0x6c   :  { %p2116_p6 = pnand %p2114_p5, %p2111_p4 }
  0x6e   :  { %2119 = shalt.err (!%p2116_p6)
}
  0x6f   :  { %s2120_s10 = scalar_lea.vmem %s160_s26, 2048  ;;  %p2125_p8 = scmp.lt.s32.totalorder %s160_s26, %s160_s26 }
  0x70   :  { %p2121_p7 = scmp.ne.s32.totalorder %s160_s26, %s2120_s10  ;;  %p2126_p9 = scmp.lt.s32.totalorder %s2120_s10, %s2120_s10 }
  0x72   :  { %p2127_p10 = por %p2126_p9, %p2125_p8 }
  0x74   :  { %p2128_p11 = pnand %p2127_p10, %p2121_p7 }
  0x76   :  { %2131 = shalt.err (!%p2128_p11)
}
  0x77   :  { %165 = dma.hbm_to_vmem [thread:$0]  %s2858_s13, 2048, %s160_s26, [#allocation18], %s2396_s2, %s2396_s2, %s2397_s27  }
  0x78   :  { %s2889_s24 = sld [smem:[#allocation38_spill]] }
  0x7e   :  { %s2132_s25 = scalar_lea.hbm %s2889_s24, 256 }
  0x7f   :  { %p2133_p12 = scmp.ne.s32.totalorder %s2889_s24, %s2132_s25  ;;  %p2136_p13 = scmp.lt.u32.totalorder %s2132_s25, %s2889_s24 }
  0x81   :  { %p2138_p0 = pnand %p2136_p13, %p2133_p12 }
  0x83   :  { %2141 = shalt.err (!%p2138_p0)
}
  0x84   :  { %s2142_s18 = scalar_lea.vmem %s2601_s1, 256  ;;  %p2147_p2 = scmp.lt.s32.totalorder %s2601_s1, %s2601_s1 }
  0x85   :  { %p2143_p1 = scmp.ne.s32.totalorder %s2601_s1, %s2142_s18  ;;  %p2148_p3 = scmp.lt.s32.totalorder %s2142_s18, %s2142_s18 }
  0x87   :  { %p2149_p4 = por %p2148_p3, %p2147_p2 }
  0x89   :  { %p2150_p5 = pnand %p2149_p4, %p2143_p1 }
  0x8b   :  { %2153 = shalt.err (!%p2150_p5)
}
  0x8c   :  { %49 = dma.hbm_to_vmem [thread:$0]  %s2889_s24, 256, %s2601_s1, [#allocation3], %s2396_s2, %s2396_s2, %s2397_s27  }
  0x8d   :  { %s2402_s20 = smov [#allocation7]   ;;  %s2403_s5 = smov [#allocation10]  }
  0x8e   :  { %s67_s4 = sshll.u32 %s2402_s20, 4  ;;  %s91_s10 = sshll.u32 %s2403_s5, 4  ;;  %s68_s4 = int_to_ptr.vmem [resolvable:$true] %s67_s4  ;;  %s2638_s10 = int_to_ptr.vmem [resolvable:$true] %s91_s10 }
  0x8f   :  { %s2890_s6 = sld [smem:[#allocation40_spill]] }
  0x95   :  { %s2154_s29 = scalar_lea.hbm %s2890_s6, 256 }
  0x96   :  { %p2155_p6 = scmp.ne.s32.totalorder %s2890_s6, %s2154_s29  ;;  %p2158_p7 = scmp.lt.u32.totalorder %s2154_s29, %s2890_s6 }
  0x98   :  { %p2160_p8 = pnand %p2158_p7, %p2155_p6 }
  0x9a   :  { %2163 = shalt.err (!%p2160_p8)
}
  0x9b   :  { %s2164_s1 = scalar_lea.vmem %s68_s4, 256  ;;  %p2169_p10 = scmp.lt.s32.totalorder %s68_s4, %s68_s4 }
  0x9c   :  { %p2165_p9 = scmp.ne.s32.totalorder %s68_s4, %s2164_s1  ;;  %p2170_p11 = scmp.lt.s32.totalorder %s2164_s1, %s2164_s1 }
  0x9e   :  { %p2171_p12 = por %p2170_p11, %p2169_p10 }
  0xa0   :  { %p2172_p13 = pnand %p2171_p12, %p2165_p9 }
  0xa2   :  { %2175 = shalt.err (!%p2172_p13)
}
  0xa3   :  { %73 = dma.hbm_to_vmem [thread:$0]  %s2890_s6, 256, %s68_s4, [#allocation6], %s2396_s2, %s2396_s2, %s2397_s27  }
  0xa4   :  { %s2891_s26 = sld [smem:[#allocation42_spill]] }
  0xaa   :  { %s2176_s20 = scalar_lea.hbm %s2891_s26, 2048 }
  0xab   :  { %p2177_p0 = scmp.ne.s32.totalorder %s2891_s26, %s2176_s20  ;;  %p2180_p1 = scmp.lt.u32.totalorder %s2176_s20, %s2891_s26 }
  0xad   :  { %p2182_p2 = pnand %p2180_p1, %p2177_p0 }
  0xaf   :  { %2185 = shalt.err (!%p2182_p2)
}
  0xb0   :  { %s2186_s25 = scalar_lea.vmem %s2638_s10, 2048  ;;  %p2191_p4 = scmp.lt.s32.totalorder %s2638_s10, %s2638_s10 }
  0xb1   :  { %p2187_p3 = scmp.ne.s32.totalorder %s2638_s10, %s2186_s25  ;;  %p2192_p5 = scmp.lt.s32.totalorder %s2186_s25, %s2186_s25 }
  0xb3   :  { %p2193_p6 = por %p2192_p5, %p2191_p4 }
  0xb5   :  { %p2194_p7 = pnand %p2193_p6, %p2187_p3 }
  0xb7   :  { %2197 = shalt.err (!%p2194_p7)
}
  0xb8   :  { %97 = dma.hbm_to_vmem [thread:$0]  %s2891_s26, 2048, %s2638_s10, [#allocation9], %s2396_s2, %s2396_s2, %s2397_s27  }
  0xb9   :  { %s2404_s30 = smov [#allocation13]   ;;  %s2405_s23 = smov [#allocation16]  }
  0xba   :  { %s119_s28 = sshll.u32 %s2404_s30, 4  ;;  %s145_s1 = sshll.u32 %s2405_s23, 4  ;;  %s120_s28 = int_to_ptr.vmem [resolvable:$true] %s119_s28  ;;  %s2675_s1 = int_to_ptr.vmem [resolvable:$true] %s145_s1 }
  0xbb   :  { %s2198_s18 = scalar_lea.hbm %s2853_s8, 2048 }
  0xbc   :  { %p2199_p8 = scmp.ne.s32.totalorder %s2853_s8, %s2198_s18  ;;  %p2202_p9 = scmp.lt.u32.totalorder %s2198_s18, %s2853_s8 }
  0xbe   :  { %p2204_p10 = pnand %p2202_p9, %p2199_p8 }
  0xc0   :  { %2207 = shalt.err (!%p2204_p10)
}
  0xc1   :  { %s2208_s10 = scalar_lea.vmem %s120_s28, 2048  ;;  %p2213_p12 = scmp.lt.s32.totalorder %s120_s28, %s120_s28 }
  0xc2   :  { %p2209_p11 = scmp.ne.s32.totalorder %s120_s28, %s2208_s10  ;;  %p2214_p13 = scmp.lt.s32.totalorder %s2208_s10, %s2208_s10 }
  0xc4   :  { %p2215_p0 = por %p2214_p13, %p2213_p12 }
  0xc6   :  { %p2216_p1 = pnand %p2215_p0, %p2209_p11 }
  0xc8   :  { %2219 = shalt.err (!%p2216_p1)
}
  0xc9   :  { %125 = dma.hbm_to_vmem [thread:$0]  %s2853_s8, 2048, %s120_s28, [#allocation12], %s2396_s2, %s2396_s2, %s2397_s27  }
  0xca   :  { %s2220_s4 = scalar_lea.hbm %s2856_s11, 2048 }
  0xcb   :  { %p2221_p2 = scmp.ne.s32.totalorder %s2856_s11, %s2220_s4  ;;  %p2224_p3 = scmp.lt.u32.totalorder %s2220_s4, %s2856_s11 }
  0xcd   :  { %p2226_p4 = pnand %p2224_p3, %p2221_p2 }
  0xcf   :  { %2229 = shalt.err (!%p2226_p4)
}
  0xd0   :  { %s2230_s3 = scalar_lea.vmem %s2675_s1, 2048  ;;  %p2235_p6 = scmp.lt.s32.totalorder %s2675_s1, %s2675_s1 }
  0xd1   :  { %p2231_p5 = scmp.ne.s32.totalorder %s2675_s1, %s2230_s3  ;;  %p2236_p7 = scmp.lt.s32.totalorder %s2230_s3, %s2230_s3 }
  0xd3   :  { %p2237_p8 = por %p2236_p7, %p2235_p6 }
  0xd5   :  { %p2238_p9 = pnand %p2237_p8, %p2231_p5 }
  0xd7   :  { %2241 = shalt.err (!%p2238_p9)
}
  0xd8   :  { %151 = dma.hbm_to_vmem [thread:$0]  %s2856_s11, 2048, %s2675_s1, [#allocation15], %s2396_s2, %s2396_s2, %s2397_s27  }
  0xd9   :  { %s2406_s18 = smov [#allocation19]   ;;  %s2407_s20 = smov [#allocation20]  }
  0xda   :  { %s173_s13 = sshll.u32 %s2406_s18, 4  ;;  %s187_s5 = sshll.u32 %s2407_s20, 4  ;;  %s174_s13 = int_to_ptr.vmem [resolvable:$true] %s173_s13  ;;  %s2712_s5 = int_to_ptr.vmem [resolvable:$true] %s187_s5 }
  0xdb   :  { %s2242_s26 = scalar_lea.hbm %s2860_s15, 2048 }
  0xdc   :  { %p2243_p10 = scmp.ne.s32.totalorder %s2860_s15, %s2242_s26  ;;  %p2246_p11 = scmp.lt.u32.totalorder %s2242_s26, %s2860_s15 }
  0xde   :  { %p2248_p12 = pnand %p2246_p11, %p2243_p10 }
  0xe0   :  { %2251 = shalt.err (!%p2248_p12)
}
  0xe1   :  { %s2252_s11 = scalar_lea.vmem %s174_s13, 2048  ;;  %p2257_p0 = scmp.lt.s32.totalorder %s174_s13, %s174_s13 }
  0xe2   :  { %p2253_p13 = scmp.ne.s32.totalorder %s174_s13, %s2252_s11  ;;  %p2258_p1 = scmp.lt.s32.totalorder %s2252_s11, %s2252_s11 }
  0xe4   :  { %p2259_p2 = por %p2258_p1, %p2257_p0 }
  0xe6   :  { %p2260_p3 = pnand %p2259_p2, %p2253_p13 }
  0xe8   :  { %2263 = shalt.err (!%p2260_p3)
}
  0xe9   :  { %179 = dma.hbm_to_vmem [thread:$0]  %s2860_s15, 2048, %s174_s13, [#allocation18], %s2396_s2, %s2396_s2, %s2397_s27  }
  0xea   :  { %s2264_s24 = scalar_lea.hbm %s2862_s17, 2048 }
  0xeb   :  { %p2265_p4 = scmp.ne.s32.totalorder %s2862_s17, %s2264_s24  ;;  %p2268_p5 = scmp.lt.u32.totalorder %s2264_s24, %s2862_s17 }
  0xed   :  { %p2270_p6 = pnand %p2268_p5, %p2265_p4 }
  0xef   :  { %2273 = shalt.err (!%p2270_p6)
}
  0xf0   :  { %s2274_s20 = scalar_lea.vmem %s2712_s5, 2048  ;;  %p2279_p8 = scmp.lt.s32.totalorder %s2712_s5, %s2712_s5 }
  0xf1   :  { %p2275_p7 = scmp.ne.s32.totalorder %s2712_s5, %s2274_s20  ;;  %p2280_p9 = scmp.lt.s32.totalorder %s2274_s20, %s2274_s20 }
  0xf3   :  { %p2281_p10 = por %p2280_p9, %p2279_p8 }
  0xf5   :  { %p2282_p11 = pnand %p2281_p10, %p2275_p7 }
  0xf7   :  { %2285 = shalt.err (!%p2282_p11)
}
  0xf8   :  { %193 = dma.hbm_to_vmem [thread:$0]  %s2862_s17, 2048, %s2712_s5, [#allocation21], %s2396_s2, %s2396_s2, %s2397_s27  }
  0xf9   :  { %2374 = dma.done.wait [#allocation3], 256  }
  0xfa   :  { %2375 = vsyncadd [#allocation3], 4294967040 }
  0xfb   :  { %2376 = dma.done.wait [#allocation6], 512  }
  0xfc   :  { %2377 = vsyncadd [#allocation6], 4294966784 }
  0xfd   :  { %2378 = dma.done.wait [#allocation9], 4096  }
  0xfe   :  { %2379 = vsyncadd [#allocation9], 4294963200 }
  0xff   :  { %2380 = dma.done.wait [#allocation12], 4096  }
 0x100   :  { %2381 = vsyncadd [#allocation12], 4294963200 }
 0x101   :  { %2382 = dma.done.wait [#allocation15], 4096  }
 0x102   :  { %2383 = vsyncadd [#allocation15], 4294963200 }
 0x103   :  { %2384 = dma.done.wait [#allocation18], 4096  }
 0x104   :  { %2385 = vsyncadd [#allocation18], 4294963200 }
 0x105   :  { %2386 = dma.done.wait [#allocation21], 2048  }
 0x106   :  { %2387 = vsyncadd [#allocation21], 4294965248  ;;  %v252_v0 = vld [vmem:[#allocation10] sm:$0xff]  ;;  %v253_v1 = vld [vmem:[#allocation10 + $0x8] sm:$0xff]  ;;  %s2892_s0 = sld [smem:[#allocation43_spill]]  ;;  %s2408_s1 = smov [#allocation22]  }
 0x107   :  { %v254_v2 = vld [vmem:[#allocation10 + $0x10] sm:$0xff]  ;;  %v1700_v3 = vpack.c.bf16 %v253_v1, %v252_v0  ;;  %v255_v4 = vld [vmem:[#allocation10 + $0x18] sm:$0xff]  ;;  %v256_v6 = vld [vmem:[#allocation10 + $0x20] sm:$0xff] }
 0x108   :  { %v1704_v5 = vpack.c.bf16 %v255_v4, %v254_v2  ;;  %v257_v7 = vld [vmem:[#allocation10 + $0x28] sm:$0xff]  ;;  %v2749_v9 = vld [vmem:[#allocation5] sm:$0xff]  ;;  %v258_v10 = vld [vmem:[#allocation10 + $0x30] sm:$0xff] }
 0x109   :  { %1701 = vmatprep.subr.bf16.mxu0 %v1700_v3  ;;  %v1708_v8 = vpack.c.bf16 %v257_v7, %v256_v6  ;;  %v259_v11 = vld [vmem:[#allocation10 + $0x38] sm:$0xff]  ;;  %1417 = vmatprep.mubr.f32.mxu0 %v2749_v9  ;;  %v260_v13 = vld [vmem:[#allocation10 + $0x40] sm:$0xff]  ;;  %v261_v14 = vld [vmem:[#allocation10 + $0x48] sm:$0xff] }
 0x10a   :  { %1703 = vmatpush3.bf16.msra.mxu0 %v1700_v3  ;;  %v1712_v12 = vpack.c.bf16 %v259_v11, %v258_v10  ;;  %v429_v15 = vld [vmem:[#allocation11] sm:$0xff]  ;;  %v430_v16 = vld [vmem:[#allocation11 + $0x8] sm:$0xff]  ;;  %v431_v17 = vld [vmem:[#allocation11 + $0x10] sm:$0xff]  ;;  %v1716_v18 = vpack.c.bf16 %v261_v14, %v260_v13 }
 0x10b   :  { %1705 = vmatprep.subr.bf16.mxu0 %v1704_v5  ;;  %v262_v19 = vld [vmem:[#allocation10 + $0x50] sm:$0xff]  ;;  %v1764_v20 = vpack.c.bf16 %v430_v16, %v429_v15  ;;  %v432_v21 = vld [vmem:[#allocation11 + $0x18] sm:$0xff]  ;;  %v433_v24 = vld [vmem:[#allocation11 + $0x20] sm:$0xff] }
 0x10c   :  { %v263_v22 = vld [vmem:[#allocation10 + $0x58] sm:$0xff]  ;;  %v1768_v23 = vpack.c.bf16 %v432_v21, %v431_v17  ;;  %v434_v25 = vld [vmem:[#allocation11 + $0x28] sm:$0xff]  ;;  %v264_v27 = vld [vmem:[#allocation10 + $0x60] sm:$0xff] }
 0x10d   :  { %1765 = vmatprep.subr.bf16.mxu1 %v1764_v20  ;;  %v1720_v26 = vpack.c.bf16 %v263_v22, %v262_v19  ;;  %v1772_v28 = vpack.c.bf16 %v434_v25, %v433_v24  ;;  %v265_v29 = vld [vmem:[#allocation10 + $0x68] sm:$0xff]  ;;  %v435_v30 = vld [vmem:[#allocation11 + $0x30] sm:$0xff]  ;;  %v436_v31 = vld [vmem:[#allocation11 + $0x38] sm:$0xff] }
 0x10e   :  { %1707 = vmatpush3.bf16.msra.mxu0 %v1704_v5  ;;  %1767 = vmatpush3.bf16.msra.mxu1 %v1764_v20  ;;  %v1724_v32 = vpack.c.bf16 %v265_v29, %v264_v27  ;;  %v266_v33 = vld [vmem:[#allocation10 + $0x70] sm:$0xff]  ;;  %v1776_v34 = vpack.c.bf16 %v436_v31, %v435_v30  ;;  %v267_v35 = vld [vmem:[#allocation10 + $0x78] sm:$0xff]  ;;  %v437_v36 = vld [vmem:[#allocation11 + $0x40] sm:$0xff] }
 0x10f   :  { %1709 = vmatprep.subr.bf16.mxu0 %v1708_v8  ;;  %1769 = vmatprep.subr.bf16.mxu1 %v1768_v23  ;;  %v438_v37 = vld [vmem:[#allocation11 + $0x48] sm:$0xff]  ;;  %v1728_v38 = vpack.c.bf16 %v267_v35, %v266_v33  ;;  %v236_v39 = vld [vmem:[#allocation8] sm:$0xff]  ;;  %v439_v42 = vld [vmem:[#allocation11 + $0x50] sm:$0xff] }
 0x110   :  { %v1780_v40 = vpack.c.bf16 %v438_v37, %v437_v36  ;;  %v237_v41 = vld [vmem:[#allocation8 + $0x8] sm:$0xff]  ;;  %v440_v43 = vld [vmem:[#allocation11 + $0x58] sm:$0xff]  ;;  %v238_v46 = vld [vmem:[#allocation8 + $0x10] sm:$0xff] }
 0x111   :  { %v1732_v44 = vpack.c.bf16 %v237_v41, %v236_v39  ;;  %v1784_v45 = vpack.c.bf16 %v440_v43, %v439_v42  ;;  %v239_v47 = vld [vmem:[#allocation8 + $0x18] sm:$0xff]  ;;  %v441_v48 = vld [vmem:[#allocation11 + $0x60] sm:$0xff]  ;;  %v442_v49 = vld [vmem:[#allocation11 + $0x68] sm:$0xff] }
 0x112   :  { %1711 = vmatpush3.bf16.msra.mxu0 %v1708_v8  ;;  %1771 = vmatpush3.bf16.msra.mxu1 %v1768_v23  ;;  %v2752_v50 = vld [vmem:[#allocation5 + $0x8] sm:$0xff]  ;;  %v1736_v51 = vpack.c.bf16 %v239_v47, %v238_v46  ;;  %v232_v52 = vld [vmem:[#allocation2] sm:$0xff]  ;;  %v240_v53 = vld [vmem:[#allocation8 + $0x20] sm:$0xff]  ;;  %v1788_v55 = vpack.c.bf16 %v442_v49, %v441_v48 }
 0x113   :  { %1713 = vmatprep.subr.bf16.mxu0 %v1712_v12  ;;  %1773 = vmatprep.subr.bf16.mxu1 %v1772_v28  ;;  %v241_v54 = vld [vmem:[#allocation8 + $0x28] sm:$0xff]  ;;  %v242_v57 = vld [vmem:[#allocation8 + $0x30] sm:$0xff]  ;;  %v243_v58 = vld [vmem:[#allocation8 + $0x38] sm:$0xff] }
 0x114   :  { %v1740_v56 = vpack.c.bf16 %v241_v54, %v240_v53  ;;  %v1744_v59 = vpack.c.bf16 %v243_v58, %v242_v57  ;;  %v244_v60 = vld [vmem:[#allocation8 + $0x40] sm:$0xff]  ;;  %v245_v61 = vld [vmem:[#allocation8 + $0x48] sm:$0xff]  ;;  %v246_v63 = vld [vmem:[#allocation8 + $0x50] sm:$0xff] }
 0x115   :  { %v1748_v62 = vpack.c.bf16 %v245_v61, %v244_v60  ;;  %v247_v0 = vld [vmem:[#allocation8 + $0x58] sm:$0xff]  ;;  %v248_v2 = vld [vmem:[#allocation8 + $0x60] sm:$0xff]  ;;  %v249_v3 = vld [vmem:[#allocation8 + $0x68] sm:$0xff] }
 0x116   :  { %1715 = vmatpush3.bf16.msra.mxu0 %v1712_v12  ;;  %1775 = vmatpush3.bf16.msra.mxu1 %v1772_v28  ;;  %v1752_v1 = vpack.c.bf16 %v247_v0, %v246_v63  ;;  %v1756_v4 = vpack.c.bf16 %v249_v3, %v248_v2  ;;  %v250_v5 = vld [vmem:[#allocation8 + $0x70] sm:$0xff]  ;;  %v251_v6 = vld [vmem:[#allocation8 + $0x78] sm:$0xff]  ;;  %v527_v13 = vld [vmem:[#allocation13] sm:$0xff] }
 0x117   :  { %1717 = vmatprep.subr.bf16.mxu0 %v1716_v18  ;;  %1777 = vmatprep.subr.bf16.mxu1 %v1776_v34  ;;  %v1760_v7 = vpack.c.bf16 %v251_v6, %v250_v5  ;;  %v233_v8 = vld [vmem:[#allocation2 + $0x8] sm:$0xff]  ;;  %v443_v10 = vld [vmem:[#allocation11 + $0x70] sm:$0xff]  ;;  %v528_v14 = vld [vmem:[#allocation13 + $0x8] sm:$0xff] }
 0x118   :  { %v444_v11 = vld [vmem:[#allocation11 + $0x78] sm:$0xff]  ;;  %v1796_v15 = vpack.c.bf16 %v528_v14, %v527_v13  ;;  %v653_v16 = vld [vmem:[#allocation16] sm:$0xff]  ;;  %v654_v17 = vld [vmem:[#allocation16 + $0x8] sm:$0xff] }
 0x119   :  { %v1792_v12 = vpack.c.bf16 %v444_v11, %v443_v10  ;;  %v1828_v19 = vpack.c.bf16 %v654_v17, %v653_v16  ;;  %v656_v20 = vld [vmem:[#allocation16 + $0x18] sm:$0xff]  ;;  %v657_v22 = vld [vmem:[#allocation16 + $0x20] sm:$0xff]  ;;  %v658_v23 = vld [vmem:[#allocation16 + $0x28] sm:$0xff] }
 0x11a   :  { %1719 = vmatpush3.bf16.msra.mxu0 %v1716_v18  ;;  %1779 = vmatpush3.bf16.msra.mxu1 %v1776_v34  ;;  %v655_v18 = vld [vmem:[#allocation16 + $0x10] sm:$0xff]  ;;  %v530_v30 = vld [vmem:[#allocation13 + $0x18] sm:$0xff]  ;;  %v531_v34 = vld [vmem:[#allocation13 + $0x20] sm:$0xff] }
 0x11b   :  { %1721 = vmatprep.subr.bf16.mxu0 %v1720_v26  ;;  %1781 = vmatprep.subr.bf16.mxu1 %v1780_v40  ;;  %v1832_v21 = vpack.c.bf16 %v656_v20, %v655_v18  ;;  %v1216_v24 = vld [vmem:[%s2892_s0] ss:$0 sm:$0xff]  ;;  %v532_v35 = vld [vmem:[#allocation13 + $0x28] sm:$0xff]  ;;  %v539_v46 = vld [vmem:[#allocation13 + $0x60] sm:$0xff] }
 0x11c   :  { %v529_v29 = vld [vmem:[#allocation13 + $0x10] sm:$0xff]  ;;  %v1804_v36 = vpack.c.bf16 %v532_v35, %v531_v34  ;;  %v536_v41 = vld [vmem:[#allocation13 + $0x48] sm:$0xff]  ;;  %v660_v54 = vld [vmem:[#allocation16 + $0x38] sm:$0xff] }
 0x11d   :  { %v1800_v33 = vpack.c.bf16 %v530_v30, %v529_v29  ;;  %v533_v37 = vld [vmem:[#allocation13 + $0x30] sm:$0xff]  ;;  %v540_v47 = vld [vmem:[#allocation13 + $0x68] sm:$0xff]  ;;  %v664_v60 = vld [vmem:[#allocation16 + $0x58] sm:$0xff] }
 0x11e   :  { %1723 = vmatpush3.bf16.msra.mxu0 %v1720_v26  ;;  %1783 = vmatpush3.bf16.msra.mxu1 %v1780_v40  ;;  %v535_v40 = vld [vmem:[#allocation13 + $0x40] sm:$0xff]  ;;  %v537_v43 = vld [vmem:[#allocation13 + $0x50] sm:$0xff]  ;;  %v1820_v48 = vpack.c.bf16 %v540_v47, %v539_v46  ;;  %v662_v57 = vld [vmem:[#allocation16 + $0x48] sm:$0xff] }
 0x11f   :  { %1725 = vmatprep.subr.bf16.mxu0 %v1724_v32  ;;  %1785 = vmatprep.subr.bf16.mxu1 %v1784_v45  ;;  %v1812_v42 = vpack.c.bf16 %v536_v41, %v535_v40  ;;  %v541_v49 = vld [vmem:[#allocation13 + $0x70] sm:$0xff]  ;;  %v666_v63 = vld [vmem:[#allocation16 + $0x68] sm:$0xff]  ;;  %v668_v2 = vld [vmem:[#allocation16 + $0x78] sm:$0xff] }
 0x120   :  { %v659_v53 = vld [vmem:[#allocation16 + $0x30] sm:$0xff]  ;;  %v638_v5 = vld [vmem:[#allocation14 + $0x8] sm:$0xff]  ;;  %v641_v11 = vld [vmem:[#allocation14 + $0x20] sm:$0xff] }
 0x121   :  { %v663_v58 = vld [vmem:[#allocation16 + $0x50] sm:$0xff]  ;;  %v645_v17 = vld [vmem:[#allocation14 + $0x40] sm:$0xff]  ;;  %v646_v18 = vld [vmem:[#allocation14 + $0x48] sm:$0xff] }
 0x122   :  { %1727 = vmatpush3.bf16.msra.mxu0 %v1724_v32  ;;  %1787 = vmatpush3.bf16.msra.mxu1 %v1784_v45  ;;  %v1848_v61 = vpack.c.bf16 %v664_v60, %v663_v58  ;;  %v643_v14 = vld [vmem:[#allocation14 + $0x30] sm:$0xff]  ;;  %v835_v34 = vld [vmem:[#allocation17 + $0x28] sm:$0xff] }
 0x123   :  { %1729 = vmatprep.subr.bf16.mxu0 %v1728_v38  ;;  %1789 = vmatprep.subr.bf16.mxu1 %v1788_v55  ;;  %v647_v20 = vld [vmem:[#allocation14 + $0x50] sm:$0xff]  ;;  %v839_v40 = vld [vmem:[#allocation17 + $0x48] sm:$0xff] }
 0x124   :  { %v832_v29 = vld [vmem:[#allocation17 + $0x10] sm:$0xff]  ;;  %v843_v46 = vld [vmem:[#allocation17 + $0x68] sm:$0xff] }
 0x126   :  { %1731 = vmatpush3.bf16.msra.mxu0 %v1728_v38  ;;  %1791 = vmatpush3.bf16.msra.mxu1 %v1788_v55  ;;  %v534_v38 = vld [vmem:[#allocation13 + $0x38] sm:$0xff]  ;;  %v1840_v55 = vpack.c.bf16 %v660_v54, %v659_v53  ;;  %v1218_v54 = vld [vmem:[%s2854_s9] ss:$0 sm:$0xff] }
 0x127   :  { %1733 = vmatprep.subr.bf16.mxu0 %v1732_v44  ;;  %1793 = vmatprep.subr.bf16.mxu1 %v1792_v12  ;;  %v1808_v39 = vpack.c.bf16 %v534_v38, %v533_v37  ;;  %v837_v37 = vld [vmem:[#allocation17 + $0x38] sm:$0xff] }
 0x129   :  { %1418 = vmatmul.mubr.f32.vlgmr.msra.gmra.mrb[0].mxu0 %v2752_v50 }
 0x12a   :  { %1735 = vmatpush3.bf16.msra.mxu0 %v1732_v44  ;;  %1452 = vmatprep.mubr.f32.mxu0 %v232_v52  ;;  %v538_v44 = vld [vmem:[#allocation13 + $0x58] sm:$0xff] }
 0x12b   :  { %1737 = vmatprep.subr.bf16.mxu0 %v1736_v51  ;;  %1795 = vmatpush3.bf16.msra.mxu1 %v1792_v12  ;;  %v1816_v45 = vpack.c.bf16 %v538_v44, %v537_v43  ;;  %v642_v12 = vld [vmem:[#allocation14 + $0x28] sm:$0xff]  ;;  %v841_v43 = vld [vmem:[#allocation17 + $0x58] sm:$0xff] }
 0x12c   :  { %1797 = vmatprep.subr.bf16.mxu1 %v1796_v15  ;;  %v1868_v13 = vpack.c.bf16 %v642_v12, %v641_v11  ;;  %v928_v11 = vld [vmem:[#allocation19] sm:$0xff]  ;;  %v929_v12 = vld [vmem:[#allocation19 + $0x8] sm:$0xff] }
 0x12e   :  { %1739 = vmatpush3.bf16.msra.mxu0 %v1736_v51  ;;  %v542_v51 = vld [vmem:[#allocation13 + $0x78] sm:$0xff] }
 0x12f   :  { %1741 = vmatprep.subr.bf16.mxu0 %v1740_v56  ;;  %v1824_v52 = vpack.c.bf16 %v542_v51, %v541_v49 }
 0x132   :  { %1743 = vmatpush3.bf16.msra.mxu0 %v1740_v56  ;;  %v661_v56 = vld [vmem:[#allocation16 + $0x40] sm:$0xff] }
 0x133   :  { %1745 = vmatprep.subr.bf16.mxu0 %v1744_v59 }
 0x136   :  { %1747 = vmatpush3.bf16.msra.mxu0 %v1744_v59  ;;  %v1844_v59 = vpack.c.bf16 %v662_v57, %v661_v56 }
 0x137   :  { %1749 = vmatprep.subr.bf16.mxu0 %v1748_v62 }
 0x13a   :  { %1751 = vmatpush3.bf16.msra.mxu0 %v1748_v62  ;;  %v665_v62 = vld [vmem:[#allocation16 + $0x60] sm:$0xff] }
 0x13b   :  { %1753 = vmatprep.subr.bf16.mxu0 %v1752_v1  ;;  %v1852_v0 = vpack.c.bf16 %v666_v63, %v665_v62  ;;  %v632_v63 = vld [vmem:[#allocation7 + $0x8] sm:$0xff] }
 0x13e   :  { %1755 = vmatpush3.bf16.msra.mxu0 %v1752_v1  ;;  %v667_v1 = vld [vmem:[#allocation16 + $0x70] sm:$0xff] }
 0x13f   :  { %1757 = vmatprep.subr.bf16.mxu0 %v1756_v4  ;;  %v1856_v3 = vpack.c.bf16 %v668_v2, %v667_v1 }
 0x142   :  { %1759 = vmatpush3.bf16.msra.mxu0 %v1756_v4  ;;  %v637_v4 = vld [vmem:[#allocation14] sm:$0xff] }
 0x143   :  { %1761 = vmatprep.subr.bf16.mxu0 %v1760_v7  ;;  %v1860_v6 = vpack.c.bf16 %v638_v5, %v637_v4 }
 0x146   :  { %1763 = vmatpush3.bf16.msra.mxu0 %v1760_v7  ;;  %v639_v7 = vld [vmem:[#allocation14 + $0x10] sm:$0xff] }
 0x147   :  { %1829 = vmatprep.subr.bf16.mxu0 %v1828_v19 }
 0x149   :  { %1453 = vmatmul.mubr.f32.vlgmr.msra.gmra.mrb[0].mxu0 %v233_v8  ;;  %v640_v8 = vld [vmem:[#allocation14 + $0x18] sm:$0xff] }
 0x14a   :  { %1557 = vmatprep.mubr.f32.mxu0 %v2749_v9  ;;  %1831 = vmatpush3.bf16.msra.mxu0 %v1828_v19  ;;  %v1836_v9 = vpack.c.bf16 %v658_v23, %v657_v22  ;;  %v1864_v10 = vpack.c.bf16 %v640_v8, %v639_v7  ;;  %v1876_v19 = vpack.c.bf16 %v646_v18, %v645_v17  ;;  %v650_v23 = vld [vmem:[#allocation14 + $0x68] sm:$0xff]  ;;  %v844_v7 = vld [vmem:[#allocation17 + $0x70] sm:$0xff]  ;;  %v845_v8 = vld [vmem:[#allocation17 + $0x78] sm:$0xff] }
 0x14b   :  { %1833 = vmatprep.subr.bf16.mxu0 %v1832_v21 }
 0x14e   :  { %1835 = vmatpush3.bf16.msra.mxu0 %v1832_v21  ;;  %v648_v21 = vld [vmem:[#allocation14 + $0x58] sm:$0xff] }
 0x14f   :  { %1837 = vmatprep.subr.bf16.mxu0 %v1836_v9  ;;  %v1880_v22 = vpack.c.bf16 %v648_v21, %v647_v20  ;;  %v931_v20 = vld [vmem:[#allocation19 + $0x18] sm:$0xff] }
 0x152   :  { %1839 = vmatpush3.bf16.msra.mxu0 %v1836_v9 }
 0x153   :  { %1841 = vmatprep.subr.bf16.mxu0 %v1840_v55 }
 0x156   :  { %1843 = vmatpush3.bf16.msra.mxu0 %v1840_v55 }
 0x157   :  { %1845 = vmatprep.subr.bf16.mxu0 %v1844_v59 }
 0x15a   :  { %1847 = vmatpush3.bf16.msra.mxu0 %v1844_v59 }
 0x15b   :  { %1849 = vmatprep.subr.bf16.mxu0 %v1848_v61 }
 0x15e   :  { %1851 = vmatpush3.bf16.msra.mxu0 %v1848_v61 }
 0x15f   :  { %1853 = vmatprep.subr.bf16.mxu0 %v1852_v0 }
 0x162   :  { %1855 = vmatpush3.bf16.msra.mxu0 %v1852_v0  ;;  %v631_v0 = vld [vmem:[#allocation7] sm:$0xff] }
 0x163   :  { %1857 = vmatprep.subr.bf16.mxu0 %v1856_v3 }
 0x166   :  { %1859 = vmatpush3.bf16.msra.mxu0 %v1856_v3 }
 0x167   :  { %1861 = vmatprep.subr.bf16.mxu0 %v1860_v6 }
 0x169   :  { %1558 = vmatmul.mubr.f32.vlgmr.msra.gmra.mrb[2].mxu0 %v2752_v50  ;;  %v649_v50 = vld [vmem:[#allocation14 + $0x60] sm:$0xff] }
 0x16a   :  { %1863 = vmatpush3.bf16.msra.mxu0 %v1860_v6  ;;  %v1884_v9 = vpack.c.bf16 %v650_v23, %v649_v50  ;;  %v932_v23 = vld [vmem:[#allocation19 + $0x20] sm:$0xff] }
 0x16b   :  { %1865 = vmatprep.subr.bf16.mxu0 %v1864_v10 }
 0x16e   :  { %1867 = vmatpush3.bf16.msra.mxu0 %v1864_v10  ;;  %v1920_v10 = vpack.c.bf16 %v845_v8, %v844_v7 }
 0x16f   :  { %1869 = vmatprep.subr.bf16.mxu0 %v1868_v13 }
 0x172   :  { %1871 = vmatpush3.bf16.msra.mxu0 %v1868_v13  ;;  %v1924_v13 = vpack.c.bf16 %v929_v12, %v928_v11 }
 0x21c   :  { %v1454_v25 = vpop.f32.mrb[0].mxu0 }
 0x21d   :  { %v426_v26 = vadd.f32 %v1454_v25, %v1216_v24  ;;  %v409_v27 = vpop.f32.mrb[1].mxu0  ;;  %v652_v25 = vld [vmem:[#allocation14 + $0x78] sm:$0xff] }
 0x21e   :  { %v425_v28 = vadd.f32 %v1216_v24, %v409_v27  ;;  %v651_v24 = vld [vmem:[#allocation14 + $0x70] sm:$0xff]  ;;  %v830_v27 = vld [vmem:[#allocation17] sm:$0xff] }
 0x21f   :  { %v428_v32 = vmax.f32 %v426_v26, 0.0  ;;  %v1888_v26 = vpack.c.bf16 %v652_v25, %v651_v24  ;;  %v934_v25 = vld [vmem:[#allocation19 + $0x30] sm:$0xff] }
 0x220   :  { %v427_v31 = vmax.f32 %v425_v28, 0.0  ;;  %v831_v28 = vld [vmem:[#allocation17 + $0x8] sm:$0xff] }
 0x221   :  { %v1892_v30 = vpack.c.bf16 %v831_v28, %v830_v27  ;;  %v936_v28 = vld [vmem:[#allocation19 + $0x40] sm:$0xff] }
 0x222   :  { %1487 = vmatprep.mubr.f32.mxu1 %v427_v31 }
 0x223   :  { %1488 = vmatmul.mubr.f32.vlgmr.msra.gmra.mrb[0].mxu1 %v428_v32 }
 0x224   :  { %1799 = vmatpush3.bf16.msra.mxu1 %v1796_v15  ;;  %1522 = vmatprep.mubr.f32.mxu1 %v427_v31  ;;  %v644_v15 = vld [vmem:[#allocation14 + $0x38] sm:$0xff] }
 0x225   :  { %1801 = vmatprep.subr.bf16.mxu1 %v1800_v33  ;;  %v1872_v16 = vpack.c.bf16 %v644_v15, %v643_v14  ;;  %v833_v31 = vld [vmem:[#allocation17 + $0x18] sm:$0xff]  ;;  %v1219_v14 = vld [vmem:[%s2857_s12] ss:$0 sm:$0xff] }
 0x227   :  { %1873 = vmatprep.subr.bf16.mxu0 %v1872_v16 }
 0x228   :  { %1803 = vmatpush3.bf16.msra.mxu1 %v1800_v33  ;;  %1875 = vmatpush3.bf16.msra.mxu0 %v1872_v16  ;;  %v834_v33 = vld [vmem:[#allocation17 + $0x20] sm:$0xff] }
 0x229   :  { %1805 = vmatprep.subr.bf16.mxu1 %v1804_v36  ;;  %1877 = vmatprep.subr.bf16.mxu0 %v1876_v19  ;;  %v1900_v35 = vpack.c.bf16 %v835_v34, %v834_v33  ;;  %v940_v34 = vld [vmem:[#allocation19 + $0x60] sm:$0xff] }
 0x22c   :  { %1807 = vmatpush3.bf16.msra.mxu1 %v1804_v36  ;;  %1879 = vmatpush3.bf16.msra.mxu0 %v1876_v19  ;;  %v836_v36 = vld [vmem:[#allocation17 + $0x30] sm:$0xff] }
 0x22d   :  { %1809 = vmatprep.subr.bf16.mxu1 %v1808_v39  ;;  %1881 = vmatprep.subr.bf16.mxu0 %v1880_v22  ;;  %v1904_v38 = vpack.c.bf16 %v837_v37, %v836_v36  ;;  %v930_v19 = vld [vmem:[#allocation19 + $0x10] sm:$0xff] }
 0x22e   :  { %v942_v37 = vld [vmem:[#allocation19 + $0x70] sm:$0xff] }
 0x230   :  { %1811 = vmatpush3.bf16.msra.mxu1 %v1808_v39  ;;  %1883 = vmatpush3.bf16.msra.mxu0 %v1880_v22  ;;  %v838_v39 = vld [vmem:[#allocation17 + $0x40] sm:$0xff]  ;;  %v1928_v22 = vpack.c.bf16 %v931_v20, %v930_v19 }
 0x231   :  { %1813 = vmatprep.subr.bf16.mxu1 %v1812_v42  ;;  %1885 = vmatprep.subr.bf16.mxu0 %v1884_v9  ;;  %v1908_v41 = vpack.c.bf16 %v839_v40, %v838_v39  ;;  %v1028_v40 = vld [vmem:[#allocation20] sm:$0xff] }
 0x234   :  { %1815 = vmatpush3.bf16.msra.mxu1 %v1812_v42  ;;  %1887 = vmatpush3.bf16.msra.mxu0 %v1884_v9  ;;  %v840_v42 = vld [vmem:[#allocation17 + $0x50] sm:$0xff]  ;;  %v933_v9 = vld [vmem:[#allocation19 + $0x28] sm:$0xff] }
 0x235   :  { %1817 = vmatprep.subr.bf16.mxu1 %v1816_v45  ;;  %1889 = vmatprep.subr.bf16.mxu0 %v1888_v26  ;;  %v1912_v44 = vpack.c.bf16 %v841_v43, %v840_v42  ;;  %v1932_v24 = vpack.c.bf16 %v933_v9, %v932_v23  ;;  %v1030_v42 = vld [vmem:[#allocation20 + $0x10] sm:$0xff] }
 0x238   :  { %1819 = vmatpush3.bf16.msra.mxu1 %v1816_v45  ;;  %1891 = vmatpush3.bf16.msra.mxu0 %v1888_v26  ;;  %v842_v45 = vld [vmem:[#allocation17 + $0x60] sm:$0xff]  ;;  %v935_v26 = vld [vmem:[#allocation19 + $0x38] sm:$0xff] }
 0x239   :  { %1821 = vmatprep.subr.bf16.mxu1 %v1820_v48  ;;  %v1916_v47 = vpack.c.bf16 %v843_v46, %v842_v45  ;;  %v1936_v27 = vpack.c.bf16 %v935_v26, %v934_v25  ;;  %v1032_v46 = vld [vmem:[#allocation20 + $0x20] sm:$0xff] }
 0x23c   :  { %1823 = vmatpush3.bf16.msra.mxu1 %v1820_v48  ;;  %v1217_v48 = vld [vmem:[%s2852_s7] ss:$0 sm:$0xff] }
 0x23d   :  { %1825 = vmatprep.subr.bf16.mxu1 %v1824_v52 }
 0x240   :  { %1827 = vmatpush3.bf16.msra.mxu1 %v1824_v52 }
 0x241   :  { %1893 = vmatprep.subr.bf16.mxu1 %v1892_v30 }
 0x243   :  { %1523 = vmatmul.mubr.f32.vlgmr.msra.gmra.mrb[2].mxu1 %v428_v32  ;;  %v1896_v32 = vpack.c.bf16 %v833_v31, %v832_v29  ;;  %v937_v29 = vld [vmem:[#allocation19 + $0x48] sm:$0xff]  ;;  %v938_v31 = vld [vmem:[#allocation19 + $0x50] sm:$0xff] }
 0x244   :  { %1895 = vmatpush3.bf16.msra.mxu1 %v1892_v30  ;;  %v1940_v30 = vpack.c.bf16 %v937_v29, %v936_v28 }
 0x245   :  { %1897 = vmatprep.subr.bf16.mxu1 %v1896_v32 }
 0x248   :  { %1899 = vmatpush3.bf16.msra.mxu1 %v1896_v32  ;;  %v939_v32 = vld [vmem:[#allocation19 + $0x58] sm:$0xff] }
 0x249   :  { %1901 = vmatprep.subr.bf16.mxu1 %v1900_v35  ;;  %v1944_v33 = vpack.c.bf16 %v939_v32, %v938_v31 }
 0x24c   :  { %1903 = vmatpush3.bf16.msra.mxu1 %v1900_v35  ;;  %v941_v35 = vld [vmem:[#allocation19 + $0x68] sm:$0xff] }
 0x24d   :  { %1905 = vmatprep.subr.bf16.mxu1 %v1904_v38  ;;  %v1948_v36 = vpack.c.bf16 %v941_v35, %v940_v34 }
 0x250   :  { %1907 = vmatpush3.bf16.msra.mxu1 %v1904_v38  ;;  %v943_v38 = vld [vmem:[#allocation19 + $0x78] sm:$0xff] }
 0x251   :  { %1909 = vmatprep.subr.bf16.mxu1 %v1908_v41  ;;  %v1952_v39 = vpack.c.bf16 %v943_v38, %v942_v37 }
 0x254   :  { %1911 = vmatpush3.bf16.msra.mxu1 %v1908_v41  ;;  %v1029_v41 = vld [vmem:[#allocation20 + $0x8] sm:$0xff] }
 0x255   :  { %1913 = vmatprep.subr.bf16.mxu1 %v1912_v44  ;;  %v1956_v43 = vpack.c.bf16 %v1029_v41, %v1028_v40 }
 0x257   :  { %1957 = vmatprep.subr.bf16.mxu0 %v1956_v43 }
 0x258   :  { %1915 = vmatpush3.bf16.msra.mxu1 %v1912_v44  ;;  %v1031_v44 = vld [vmem:[#allocation20 + $0x18] sm:$0xff] }
 0x259   :  { %1917 = vmatprep.subr.bf16.mxu1 %v1916_v47  ;;  %v1960_v45 = vpack.c.bf16 %v1031_v44, %v1030_v42 }
 0x25c   :  { %1919 = vmatpush3.bf16.msra.mxu1 %v1916_v47  ;;  %v1033_v47 = vld [vmem:[#allocation20 + $0x28] sm:$0xff] }
 0x25d   :  { %1921 = vmatprep.subr.bf16.mxu1 %v1920_v10 }
 0x260   :  { %1923 = vmatpush3.bf16.msra.mxu1 %v1920_v10 }
 0x261   :  { %1925 = vmatprep.subr.bf16.mxu1 %v1924_v13 }
 0x2f6   :  { %v1489_v49 = vpop.f32.mrb[0].mxu1 }
 0x2f7   :  { %v524_v51 = vadd.f32 %v1489_v49, %v1217_v48  ;;  %v518_v52 = vpop.f32.mrb[1].mxu1  ;;  %v1034_v49 = vld [vmem:[#allocation20 + $0x30] sm:$0xff] }
 0x2f8   :  { %v519_v53 = vadd.f32 %v1217_v48, %v518_v52  ;;  %v1964_v48 = vpack.c.bf16 %v1033_v47, %v1032_v46 }
 0x2f9   :  { %1143 = vst [vmem:[#allocation25 + $0x8] sm:$0xff] %v524_v51 }
 0x2fa   :  { %1142 = vst [vmem:[#allocation25] sm:$0xff] %v519_v53 }
 0x316   :  { %v1524_v55 = vpop.f32.mrb[2].mxu1 }
 0x317   :  { %v622_v56 = vadd.f32 %v1524_v55, %v1218_v54  ;;  %v616_v57 = vpop.f32.mrb[3].mxu1 }
 0x318   :  { %v617_v58 = vadd.f32 %v1218_v54, %v616_v57  ;;  %v1037_v54 = vld [vmem:[#allocation20 + $0x48] sm:$0xff]  ;;  %v1039_v57 = vld [vmem:[#allocation20 + $0x58] sm:$0xff] }
 0x319   :  { %v626_v59 = vmul.f32 0.5, %v622_v56  ;;  %1145 = vst [vmem:[#allocation26 + $0x8] sm:$0xff] %v622_v56  ;;  %v1038_v56 = vld [vmem:[#allocation20 + $0x50] sm:$0xff] }
 0x31a   :  { %v625_v60 = vmul.f32 0.5, %v617_v58  ;;  %1144 = vst [vmem:[#allocation26] sm:$0xff] %v617_v58  ;;  %v1976_v58 = vpack.c.bf16 %v1039_v57, %v1038_v56 }
 0x31b   :  { %v629_v61 = vmul.f32 1.442695, %v626_v59  ;;  %v1040_v59 = vld [vmem:[#allocation20 + $0x60] sm:$0xff] }
 0x31c   :  { %v627_v62 = vmul.f32 1.442695, %v625_v60  ;;  %v1041_v60 = vld [vmem:[#allocation20 + $0x68] sm:$0xff] }
 0x31d   :  { %2010 = vpow2.f32 %v629_v61  ;;  %v1980_v61 = vpack.c.bf16 %v1041_v60, %v1040_v59 }
 0x31e   :  { %2012 = vpow2.f32 %v627_v62  ;;  %v1042_v62 = vld [vmem:[#allocation20 + $0x70] sm:$0xff] }
 0x327   :  { %v2011_v1 = vpop.eup %2010 }
 0x328   :  { %v2013_v2 = vpop.eup %2012  ;;  %v634_v3 = vmul.f32 %v2011_v1, %v632_v63  ;;  %v1043_v63 = vld [vmem:[#allocation20 + $0x78] sm:$0xff]  ;;  %v1220_v1 = vld [vmem:[%s2859_s14] ss:$0 sm:$0xff]  ;;  %s1151_s14 = sshll.u32 %s2408_s1, 4  ;;  %s1152_s14 = int_to_ptr.vmem [resolvable:$true] %s1151_s14 }
 0x329   :  { %v633_v4 = vmul.f32 %v2013_v2, %v631_v0  ;;  %v1984_v0 = vpack.c.bf16 %v1043_v63, %v1042_v62  ;;  %s2286_s6 = scalar_lea.vmem %s1152_s14, 256  ;;  %p2291_p13 = scmp.lt.s32.totalorder %s1152_s14, %s1152_s14 }
 0x32a   :  { %v636_v5 = vadd.f32 %v634_v3, %v524_v51  ;;  %v1035_v51 = vld [vmem:[#allocation20 + $0x38] sm:$0xff]  ;;  %p2287_p12 = scmp.ne.s32.totalorder %s1152_s14, %s2286_s6  ;;  %p2292_p0 = scmp.lt.s32.totalorder %s2286_s6, %s2286_s6 }
 0x32b   :  { %v635_v6 = vadd.f32 %v633_v4, %v519_v53  ;;  %v1968_v52 = vpack.c.bf16 %v1035_v51, %v1034_v49  ;;  %v1036_v53 = vld [vmem:[#allocation20 + $0x40] sm:$0xff] }
 0x32c   :  { %v1972_v55 = vpack.c.bf16 %v1037_v54, %v1036_v53  ;;  %p2293_p1 = por %p2292_p0, %p2291_p13 }
 0x32d   :  { %1592 = vmatprep.mubr.f32.mxu0 %v635_v6 }
 0x32e   :  { %1593 = vmatmul.mubr.f32.vlgmr.msra.gmra.mrb[2].mxu0 %v636_v5  ;;  %p2294_p2 = pnand %p2293_p1, %p2287_p12 }
 0x32f   :  { %1959 = vmatpush3.bf16.msra.mxu0 %v1956_v43 }
 0x330   :  { %1961 = vmatprep.subr.bf16.mxu0 %v1960_v45 }
 0x333   :  { %1963 = vmatpush3.bf16.msra.mxu0 %v1960_v45 }
 0x334   :  { %1965 = vmatprep.subr.bf16.mxu0 %v1964_v48 }
 0x337   :  { %1967 = vmatpush3.bf16.msra.mxu0 %v1964_v48 }
 0x338   :  { %1969 = vmatprep.subr.bf16.mxu0 %v1968_v52 }
 0x33b   :  { %1971 = vmatpush3.bf16.msra.mxu0 %v1968_v52 }
 0x33c   :  { %1973 = vmatprep.subr.bf16.mxu0 %v1972_v55 }
 0x33f   :  { %1975 = vmatpush3.bf16.msra.mxu0 %v1972_v55 }
 0x340   :  { %1977 = vmatprep.subr.bf16.mxu0 %v1976_v58 }
 0x343   :  { %1979 = vmatpush3.bf16.msra.mxu0 %v1976_v58 }
 0x344   :  { %1981 = vmatprep.subr.bf16.mxu0 %v1980_v61 }
 0x347   :  { %1983 = vmatpush3.bf16.msra.mxu0 %v1980_v61 }
 0x348   :  { %1985 = vmatprep.subr.bf16.mxu0 %v1984_v0 }
 0x34b   :  { %1987 = vmatpush3.bf16.msra.mxu0 %v1984_v0 }
 0x401   :  { %v1594_v15 = vpop.f32.mrb[2].mxu0 }
 0x402   :  { %v827_v16 = vadd.f32 %v1594_v15, %v1219_v14  ;;  %v810_v17 = vpop.f32.mrb[3].mxu0 }
 0x403   :  { %v826_v18 = vadd.f32 %v1219_v14, %v810_v17 }
 0x404   :  { %v829_v50 = vmax.f32 %v827_v16, 0.0 }
 0x405   :  { %v828_v21 = vmax.f32 %v826_v18, 0.0 }
 0x407   :  { %1627 = vmatprep.mubr.f32.mxu1 %v828_v21 }
 0x408   :  { %1628 = vmatmul.mubr.f32.vlgmr.msra.gmra.mrb[4].mxu1 %v829_v50 }
 0x409   :  { %1927 = vmatpush3.bf16.msra.mxu1 %v1924_v13  ;;  %1662 = vmatprep.mubr.f32.mxu1 %v635_v6  ;;  %v1221_v6 = vld [vmem:[%s2861_s16] ss:$0 sm:$0xff] }
 0x40a   :  { %1929 = vmatprep.subr.bf16.mxu1 %v1928_v22 }
 0x40d   :  { %1931 = vmatpush3.bf16.msra.mxu1 %v1928_v22 }
 0x40e   :  { %1933 = vmatprep.subr.bf16.mxu1 %v1932_v24 }
 0x411   :  { %1935 = vmatpush3.bf16.msra.mxu1 %v1932_v24 }
 0x412   :  { %1937 = vmatprep.subr.bf16.mxu1 %v1936_v27 }
 0x415   :  { %1939 = vmatpush3.bf16.msra.mxu1 %v1936_v27 }
 0x416   :  { %1941 = vmatprep.subr.bf16.mxu1 %v1940_v30 }
 0x419   :  { %1943 = vmatpush3.bf16.msra.mxu1 %v1940_v30 }
 0x41a   :  { %1945 = vmatprep.subr.bf16.mxu1 %v1944_v33 }
 0x41d   :  { %1947 = vmatpush3.bf16.msra.mxu1 %v1944_v33 }
 0x41e   :  { %1949 = vmatprep.subr.bf16.mxu1 %v1948_v36 }
 0x421   :  { %1951 = vmatpush3.bf16.msra.mxu1 %v1948_v36 }
 0x422   :  { %1953 = vmatprep.subr.bf16.mxu1 %v1952_v39 }
 0x425   :  { %1955 = vmatpush3.bf16.msra.mxu1 %v1952_v39 }
 0x428   :  { %1663 = vmatmul.mubr.f32.vlgmr.msra.gmra.mrb[6].mxu1 %v636_v5 }
 0x4db   :  { %v1629_v2 = vpop.f32.mrb[4].mxu1 }
 0x4dc   :  { %v925_v3 = vadd.f32 %v1629_v2, %v1220_v1  ;;  %v919_v4 = vpop.f32.mrb[5].mxu1 }
 0x4dd   :  { %v920_v5 = vadd.f32 %v1220_v1, %v919_v4 }
 0x4de   :  { %1139 = vst [vmem:[#allocation22 + $0x8] sm:$0xff] %v925_v3 }
 0x4df   :  { %1138 = vst [vmem:[#allocation22] sm:$0xff] %v920_v5 }
 0x4fb   :  { %v1664_v7 = vpop.f32.mrb[6].mxu1 }
 0x4fc   :  { %v1023_v8 = vadd.f32 %v1664_v7, %v1221_v6  ;;  %v1017_v10 = vpop.f32.mrb[7].mxu1 }
 0x4fd   :  { %v1018_v11 = vadd.f32 %v1221_v6, %v1017_v10 }
 0x4fe   :  { %v1027_v13 = vmax.f32 %v1023_v8, 0.0 }
 0x4ff   :  { %v1026_v12 = vmax.f32 %v1018_v11, 0.0 }
 0x501   :  { %1697 = vmatprep.mubr.f32.mxu0 %v1026_v12 }
 0x502   :  { %1698 = vmatmul.mubr.f32.vlgmr.msra.gmra.mrb[4].mxu0 %v1027_v13 }
 0x503   :  { %2297 = shalt.err (!%p2294_p2)
}
 0x504   :  { %s2298_s23 = scalar_lea.hbm %s2864_s19, 256 }
 0x505   :  { %p2299_p3 = scmp.ne.s32.totalorder %s2864_s19, %s2298_s23  ;;  %p2302_p4 = scmp.lt.u32.totalorder %s2298_s23, %s2864_s19 }
 0x507   :  { %p2304_p5 = pnand %p2302_p4, %p2299_p3 }
 0x509   :  { %2307 = shalt.err (!%p2304_p5)
}
 0x50a   :  { %1157 = dma.vmem_to_hbm [thread:$0]  %s1152_s14, 256, %s2864_s19, [#allocation4], %s2396_s2, %s2396_s2, %s2397_s27  }
 0x50b   :  { %s2409_s15 = smov [#allocation26]  }
 0x50c   :  { %s1187_s13 = sshll.u32 %s2409_s15, 4  ;;  %s1188_s13 = int_to_ptr.vmem [resolvable:$true] %s1187_s13 }
 0x50d   :  { %s2308_s17 = scalar_lea.vmem %s1188_s13, 256  ;;  %p2313_p7 = scmp.lt.s32.totalorder %s1188_s13, %s1188_s13 }
 0x50e   :  { %p2309_p6 = scmp.ne.s32.totalorder %s1188_s13, %s2308_s17  ;;  %p2314_p8 = scmp.lt.s32.totalorder %s2308_s17, %s2308_s17 }
 0x510   :  { %p2315_p9 = por %p2314_p8, %p2313_p7 }
 0x512   :  { %p2316_p10 = pnand %p2315_p9, %p2309_p6 }
 0x514   :  { %2319 = shalt.err (!%p2316_p10)
}
 0x515   :  { %s2320_s10 = scalar_lea.hbm %s2867_s22, 256 }
 0x516   :  { %p2321_p11 = scmp.ne.s32.totalorder %s2867_s22, %s2320_s10  ;;  %p2324_p12 = scmp.lt.u32.totalorder %s2320_s10, %s2867_s22 }
 0x518   :  { %p2326_p13 = pnand %p2324_p12, %p2321_p11 }
 0x51a   :  { %2329 = shalt.err (!%p2326_p13)
}
 0x51b   :  { %1193 = dma.vmem_to_hbm [thread:$0]  %s1188_s13, 256, %s2867_s22, [#allocation27], %s2396_s2, %s2396_s2, %s2397_s27  }
 0x51c   :  { %s2893_s4 = sld [smem:[#allocation45_spill]]  ;;  %s2410_s22 = smov [#allocation23]  }
 0x51d   :  { %s1163_s11 = sshll.u32 %s2410_s22, 4  ;;  %s2411_s1 = smov [#allocation25]   ;;  %s1164_s11 = int_to_ptr.vmem [resolvable:$true] %s1163_s11 }
 0x51e   :  { %s1175_s14 = sshll.u32 %s2411_s1, 4  ;;  %s2330_s6 = scalar_lea.vmem %s1164_s11, 256  ;;  %s2808_s14 = int_to_ptr.vmem [resolvable:$true] %s1175_s14 }
 0x51f   :  { %p2331_p0 = scmp.ne.s32.totalorder %s1164_s11, %s2330_s6  ;;  %p2335_p1 = scmp.lt.s32.totalorder %s1164_s11, %s1164_s11 }
 0x520   :  { %p2336_p2 = scmp.lt.s32.totalorder %s2330_s6, %s2330_s6 }
 0x522   :  { %v1222_v14 = vld [vmem:[%s2893_s4] ss:$0 sm:$0xff]  ;;  %p2337_p3 = por %p2336_p2, %p2335_p1 }
 0x524   :  { %p2338_p4 = pnand %p2337_p3, %p2331_p0 }
 0x5d5   :  { %v1699_v15 = vpop.f32.mrb[4].mxu0 }
 0x5d6   :  { %v1123_v16 = vadd.f32 %v1699_v15, %v1222_v14  ;;  %v1117_v17 = vpop.f32.mrb[5].mxu0 }
 0x5d7   :  { %v1118_v18 = vadd.f32 %v1222_v14, %v1117_v17 }
 0x5d8   :  { %v1127_v19 = vsub.f32 0.0, %v1123_v16 }
 0x5d9   :  { %v1126_v20 = vsub.f32 0.0, %v1118_v18 }
 0x5da   :  { %v1130_v21 = vmul.f32 1.442695, %v1127_v19 }
 0x5db   :  { %v1128_v50 = vmul.f32 1.442695, %v1126_v20 }
 0x5dc   :  { %2014 = vpow2.f32 %v1130_v21 }
 0x5dd   :  { %2016 = vpow2.f32 %v1128_v50 }
 0x5e6   :  { %v2015_v22 = vpop.eup %2014 }
 0x5e7   :  { %v2017_v23 = vpop.eup %2016  ;;  %v1133_v9 = vadd.f32 1.0, %v2015_v22 }
 0x5e8   :  { %v1132_v24 = vadd.f32 1.0, %v2017_v23 }
 0x5e9   :  { %2018 = vrcp.f32 %v1133_v9 }
 0x5ea   :  { %2020 = vrcp.f32 %v1132_v24 }
 0x5f3   :  { %v2019_v25 = vpop.eup %2018 }
 0x5f4   :  { %v2021_v26 = vpop.eup %2020  ;;  %1141 = vst [vmem:[#allocation23 + $0x8] sm:$0xff] %v2019_v25 }
 0x5f5   :  { %1140 = vst [vmem:[#allocation23] sm:$0xff] %v2021_v26 }
 0x5f6   :  { %2341 = shalt.err (!%p2338_p4)
}
 0x5f7   :  { %s2894_s23 = sld [smem:[#allocation46_spill]] }
 0x5fd   :  { %s2342_s24 = scalar_lea.hbm %s2894_s23, 256 }
 0x5fe   :  { %p2343_p5 = scmp.ne.s32.totalorder %s2894_s23, %s2342_s24  ;;  %p2346_p6 = scmp.lt.u32.totalorder %s2342_s24, %s2894_s23 }
 0x600   :  { %p2348_p7 = pnand %p2346_p6, %p2343_p5 }
 0x602   :  { %2351 = shalt.err (!%p2348_p7)
}
 0x603   :  { %1169 = dma.vmem_to_hbm [thread:$0]  %s1164_s11, 256, %s2894_s23, [#allocation24], %s2396_s2, %s2396_s2, %s2397_s27  }
 0x604   :  { %s2352_s13 = scalar_lea.vmem %s2808_s14, 256  ;;  %p2357_p9 = scmp.lt.s32.totalorder %s2808_s14, %s2808_s14 }
 0x605   :  { %p2353_p8 = scmp.ne.s32.totalorder %s2808_s14, %s2352_s13  ;;  %p2358_p10 = scmp.lt.s32.totalorder %s2352_s13, %s2352_s13 }
 0x607   :  { %p2359_p11 = por %p2358_p10, %p2357_p9 }
 0x609   :  { %p2360_p12 = pnand %p2359_p11, %p2353_p8 }
 0x60b   :  { %2363 = shalt.err (!%p2360_p12)
}
 0x60c   :  { %s2895_s0 = sld [smem:[#allocation47_spill]] }
 0x612   :  { %s2364_s10 = scalar_lea.hbm %s2895_s0, 256 }
 0x613   :  { %p2365_p13 = scmp.ne.s32.totalorder %s2895_s0, %s2364_s10  ;;  %p2368_p0 = scmp.lt.u32.totalorder %s2364_s10, %s2895_s0 }
 0x615   :  { %p2370_p1 = pnand %p2368_p0, %p2365_p13 }
 0x617   :  { %2373 = shalt.err (!%p2370_p1)
}
 0x618   :  { %1181 = dma.vmem_to_hbm [thread:$0]  %s2808_s14, 256, %s2895_s0, [#allocation24], %s2396_s2, %s2396_s2, %s2397_s27  }
 0x619   :  { %2388 = dma.done.wait [#allocation4], 256  }
 0x61a   :  { %2389 = vsyncadd [#allocation4], 4294967040 }
 0x61b   :  { %2390 = dma.done.wait [#allocation24], 512  }
 0x61c   :  { %2391 = vsyncadd [#allocation24], 4294966784 }
 0x61d   :  { %2392 = dma.done.wait [#allocation27], 256  }
 0x61e   :  { %2393 = vsyncadd [#allocation27], 4294967040 }
 0x61f   :  { %1206 = vsyncpa [#allocation3], 1 }
 0x620   :  { %1207 = vsyncpa [#allocation6], 1 }
 0x621   :  { %1208 = vsyncpa [#allocation9], 1 }
 0x622   :  { %1209 = vsyncpa [#allocation12], 1 }
 0x623   :  { %1210 = vsyncpa [#allocation15], 1 }
 0x624   :  { %1211 = vsyncpa [#allocation18], 1 }
 0x625   :  { %1212 = vsyncpa [#allocation21], 1 }
 0x626   :  { %1213 = vsyncpa [#allocation4], 1 }
 0x627   :  { %1214 = vsyncpa [#allocation24], 1 }
 0x628   :  { %1215 = vsyncpa [#allocation27], 1 }

</bundles_post_ra>
